<compile_context>
chip_gen: v7x
topology: tpu7x:2x2x1
jax: 0.10.0
libtpu: 0.0.40
codegen_flags: <defaults>
</compile_context>

<pallas_src>
import math
import numpy as np

import jax
import jax.numpy as jnp
from jax.experimental import pallas as pl
from jax.experimental.pallas import tpu as pltpu


def _round_up(a, b):
    return (a + b - 1) // b * b


def _cdiv(a, b):
    return -(-a // b)


# ----------------------------------------------------------------------------
# Filter construction (exact port of alias/filter.py::kaiser_sinc_filter1d)
# ----------------------------------------------------------------------------
def kaiser_sinc_filter1d(cutoff, half_width, kernel_size):
    even = (kernel_size % 2 == 0)
    half_size = kernel_size // 2

    delta_f = 4 * half_width
    A = 2.285 * (half_size - 1) * math.pi * delta_f + 7.95
    if A > 50.0:
        beta = 0.1102 * (A - 8.7)
    elif A >= 21.0:
        beta = 0.5842 * (A - 21.0) ** 0.4 + 0.07886 * (A - 21.0)
    else:
        beta = 0.0
    window = np.kaiser(kernel_size, beta)  # == torch.kaiser_window(periodic=False)

    if even:
        time = np.arange(-half_size, half_size) + 0.5
    else:
        time = np.arange(kernel_size) - half_size

    if cutoff == 0:
        filt = np.zeros_like(time)
    else:
        filt = 2 * cutoff * window * np.sinc(2 * cutoff * time)
        filt = filt / filt.sum()
    return filt.astype(np.float32)


# ----------------------------------------------------------------------------
# Host-side construction of banded per-time-tile operators (deduplicated)
# ----------------------------------------------------------------------------
def _build_banded_operators(T, r_up, r_dn, K_up, K_dn, TT):
    """Banded operators for one output tile of TT samples.

    For output tile n:
      window  = xa[:, n*BLK : n*BLK + BLK + WH]      (aligned main block + halo)
      y_local = window @ [U1; U2]                    (upsample, transposed FIR)
      out     = snake(y_local) @ D                   (low-pass FIR + decimate)
    xa is the replicate-padded input shifted so every window starts at a
    multiple of BLK=128.  Boundary replicate padding (input and intermediate)
    is baked into the first/last tile operators; interior tiles share a single
    operator, so only a handful of unique (U1, U2, D) triples exist.
    """
    filt_up = kaiser_sinc_filter1d(0.5 / r_up, 0.6 / r_up, K_up)
    filt_dn = kaiser_sinc_filter1d(0.5 / r_dn, 0.6 / r_dn, K_dn)

    pad_up = K_up // r_up - 1
    PL = pad_up * r_up + (K_up - r_up) // 2      # crop offset of conv_transpose
    Lxp = T + 2 * pad_up                         # replicate-padded input length
    Ty = r_up * T                                # intermediate (upsampled) length

    even_dn = (K_dn % 2 == 0)
    pad_l = K_dn // 2 - 1 if even_dn else K_dn // 2
    pad_r = K_dn // 2
    Tout = (Ty + pad_l + pad_r - K_dn) // r_dn + 1

    if (r_dn * TT) % r_up != 0:
        raise ValueError("r_dn * time_tile must be divisible by r_up")
    BLK = (r_dn * TT) // r_up                    # input samples consumed per tile
    if BLK % 128 != 0:
        raise ValueError("input block per tile must be lane aligned (multiple of 128)")

    NT = max(1, _cdiv(Tout, TT))
    # Intermediate halo: just enough for the downsampler's replicate padding,
    # rounded to 8 for sublane alignment (was 16 before; Wm 288 -> 272).
    Hm = _round_up(max(pad_l, pad_r - r_dn + 1, 1), 8)
    Wm = r_dn * TT + 2 * Hm

    c0 = _cdiv(PL - Hm - K_up + 1, r_up)         # window start rel. to n*BLK
    c1 = (Hm + PL - 1) // r_up                   # window end   rel. to (n+1)*BLK
    SH = max(0, -c0)                             # left shift inside the aligned array
    WH = _round_up(max(c1 + SH + 1, 1), 8)       # halo width from block n+1
    if WH > BLK:
        raise ValueError("halo wider than one input block")
    L128 = (NT + 1) * BLK                        # aligned input array length
    if L128 < T + SH + 2 * pad_up:
        raise ValueError("aligned input array too short")

    def interior(n):
        y0 = r_dn * n * TT - Hm
        return (y0 >= 0 and y0 + Wm <= Ty
                and n * BLK + c0 >= 0
                and (n + 1) * BLK + c1 <= Lxp - 1
                and r_dn * n * TT - pad_l >= 0
                and r_dn * ((n + 1) * TT - 1) + (K_dn - 1) - pad_l <= Ty - 1
                and (n + 1) * TT <= Tout)

    def build_tile(n):
        U = np.zeros((BLK + WH, Wm), np.float32)
        D = np.zeros((Wm, TT), np.float32)
        y0 = r_dn * n * TT - Hm
        j0 = n * BLK
        # upsample band: y[m] = r_up * sum_i xpad[i] * f_up[m + PL - r_up*i]
        for mm in range(Wm):
            m = y0 + mm
            if m < 0 or m >= Ty:
                continue
            i_lo = _cdiv(m + PL - K_up + 1, r_up)
            i_hi = (m + PL) // r_up
            for i in range(max(i_lo, 0), min(i_hi, Lxp - 1) + 1):
                k = m + PL - r_up * i
                li = i + SH - j0
                if not (0 <= li < BLK + WH):
                    raise ValueError("upsample window does not cover its band")
                U[li, mm] += r_up * filt_up[k]
        # downsample band: out[t] = sum_k f_dn[k] * y[clamp(r_dn*t + k - pad_l)]
        for tt in range(TT):
            t = n * TT + tt
            if t >= Tout:
                continue
            for k in range(K_dn):
                m = min(max(r_dn * t + k - pad_l, 0), Ty - 1)
                lm = m - y0
                if not (0 <= lm < Wm):
                    raise ValueError("downsample window does not cover its band")
                D[lm, tt] += filt_dn[k]
        return U, D

    op_of_tile = np.zeros((NT,), np.int32)
    U_list, D_list = [], []
    interior_id = -1
    for n in range(NT):
        if interior(n) and interior_id >= 0:
            op_of_tile[n] = interior_id
            continue
        U, D = build_tile(n)
        idx = len(U_list)
        U_list.append(U)
        D_list.append(D)
        op_of_tile[n] = idx
        if interior(n):
            interior_id = idx

    U_all = np.stack(U_list)                     # (NU, BLK+WH, Wm)
    D_all = np.stack(D_list)                     # (NU, Wm, TT)
    return dict(U1=U_all[:, :BLK, :], U2=U_all[:, BLK:, :], D=D_all,
                op_of_tile=op_of_tile, NT=NT, Tout=Tout, Wm=Wm, WH=WH,
                SH=SH, pad_up=pad_up, L128=L128, BLK=BLK)


# ----------------------------------------------------------------------------
# Pallas kernel: banded upsample matmuls -> SnakeBeta -> banded downsample matmul
# ----------------------------------------------------------------------------
def _activation1d_kernel(op_ref, xa_ref, xb_ref, u1_ref, u2_ref, d_ref,
                         a_ref, ib_ref, o_ref):
    # op_ref : (NT,)        int32  tile -> operator index (SMEM, used by index maps)
    # xa_ref : (CM, BLK)    bf16   aligned main input block for this time tile
    # xb_ref : (CM, BLK)    bf16   next aligned block (only first WH columns used)
    # u1_ref : (1, BLK, Wm) bf16   upsample band, main-block rows
    # u2_ref : (1, WH, Wm)  bf16   upsample band, halo rows
    # d_ref  : (1, Wm, TT)  bf16   downsample band (+ decimation)
    # a_ref  : (CM, 1)      f32    alpha = exp(log_alpha)
    # ib_ref : (CM, 1)      f32    1 / (exp(log_beta) + 1e-9)
    # o_ref  : (CM, TT)     f32
    wh = u2_ref.shape[1]
    y = jnp.dot(xa_ref[...], u1_ref[0], preferred_element_type=jnp.float32)
    y = y + jnp.dot(xb_ref[:, :wh], u2_ref[0],
                    preferred_element_type=jnp.float32)                # (CM, Wm) f32

    # SnakeBeta (alpha_logscale=True): y + (1/(exp(b)+eps)) * sin(exp(a)*y)^2
    # Kept in f32 (filter/stopband fidelity); exp/divide precomputed host-side.
    s = jnp.sin(y * a_ref[...])
    y = y + (s * s) * ib_ref[...]

    o_ref[...] = jnp.dot(y.astype(jnp.bfloat16), d_ref[0],
                         preferred_element_type=jnp.float32)           # (CM, TT)


def activation1d(x, log_alpha, log_beta, *,
                 up_ratio=2, down_ratio=2,
                 up_kernel_size=12, down_kernel_size=12,
                 time_tile=128, m_tile=512):
    """Activation1d forward: x (B, C, T) f32 -> (B, C, T) f32."""
    B, C, T = x.shape
    TT = _round_up(time_tile, 128)               # keep at 128: FLOPs/output ~ O(TT)

    ops = _build_banded_operators(T, up_ratio, down_ratio,
                                  up_kernel_size, down_kernel_size, TT)
    NT, Tout, Wm, WH = ops["NT"], ops["Tout"], ops["Wm"], ops["WH"]
    SH, pad_up, L128, BLK = ops["SH"], ops["pad_up"], ops["L128"], ops["BLK"]

    # Operators in bf16 (MXU native); f32 accumulation happens in-kernel.
    U1 = jnp.asarray(ops["U1"], jnp.bfloat16)    # (NU, BLK, Wm)
    U2 = jnp.asarray(ops["U2"], jnp.bfloat16)    # (NU, WH, Wm)
    Dm = jnp.asarray(ops["D"], jnp.bfloat16)     # (NU, Wm, TT)
    op_of_tile = jnp.asarray(ops["op_of_tile"])  # (NT,) int32, scalar prefetch

    # Fold B*C into the matmul M dimension; size CM to minimise pad waste.
    BC = B * C
    NM = max(1, _cdiv(BC, max(m_tile, 16)))
    CM = _round_up(_cdiv(BC, NM), 16)
    BC_pad = NM * CM
    pad_rows = BC_pad - BC

    # SnakeBeta parameters precomputed once (no per-step exp / divide in-kernel).
    alpha = jnp.exp(log_alpha.astype(jnp.float32))
    inv_beta = 1.0 / (jnp.exp(log_beta.astype(jnp.float32)) + 1e-9)
    alpha_rows = jnp.pad(jnp.tile(alpha, B), (0, pad_rows),
                         constant_values=1.0).reshape(BC_pad, 1)
    ibeta_rows = jnp.pad(jnp.tile(inv_beta, B), (0, pad_rows),
                         constant_values=1.0).reshape(BC_pad, 1)

    # Single cheap prep pass: replicate pad + alignment shift + bf16 cast.
    # Extra replicate columns / rows beyond what UpSample1d needs only ever meet
    # all-zero operator rows (or are sliced off), so one 'edge' pad suffices.
    xr = x.reshape(BC, T)
    xa = jnp.pad(xr, ((0, pad_rows), (SH + pad_up, L128 - T - SH - pad_up)),
                 mode="edge").astype(jnp.bfloat16)                     # (BC_pad, L128)

    grid_spec = pltpu.PrefetchScalarGridSpec(
        num_scalar_prefetch=1,
        grid=(NT, NM),                           # time tiles (outer), M tiles (inner)
        in_specs=[
            pl.BlockSpec((CM, BLK), lambda n, m, oi: (m, n)),           # main block
            pl.BlockSpec((CM, BLK), lambda n, m, oi: (m, n + 1)),       # halo source
            pl.BlockSpec((1, BLK, Wm), lambda n, m, oi: (oi[n], 0, 0)),  # U1
            pl.BlockSpec((1, WH, Wm), lambda n, m, oi: (oi[n], 0, 0)),   # U2
            pl.BlockSpec((1, Wm, TT), lambda n, m, oi: (oi[n], 0, 0)),   # D
            pl.BlockSpec((CM, 1), lambda n, m, oi: (m, 0)),              # alpha
            pl.BlockSpec((CM, 1), lambda n, m, oi: (m, 0)),              # 1/(beta+eps)
        ],
        out_specs=pl.BlockSpec((CM, TT), lambda n, m, oi: (m, n)),       # lane-dense
    )

    out = pl.pallas_call(
        _activation1d_kernel,
        out_shape=jax.ShapeDtypeStruct((BC_pad, NT * TT), jnp.float32),
        grid_spec=grid_spec,
        compiler_params=pltpu.CompilerParams(
            dimension_semantics=("parallel", "parallel")),
        # NOTE: per-step VMEM is ~1-2 MB; default scoped VMEM limit is plenty.
    )(op_of_tile, xa, xa, U1, U2, Dm, alpha_rows, ibeta_rows)

    return out[:BC, :Tout].reshape(B, C, Tout)


# ----------------------------------------------------------------------------
# Pure-JAX reference (direct port of the PyTorch forward) for verification
# ----------------------------------------------------------------------------
def reference(x, log_alpha, log_beta, filt_up, filt_dn, r):
    B, C, T = x.shape
    K = filt_up.shape[0]
    pad = K // r - 1
    pad_left = pad * r + (K - r) // 2

    # UpSample1d: replicate pad, zero-stuff, full conv with filter, *r, crop
    xr = jnp.pad(x, ((0, 0), (0, 0), (pad, pad)), mode="edge")
    Lp = T + 2 * pad
    Lu = (Lp - 1) * r + 1
    u = jnp.zeros((B, C, Lu), x.dtype).at[..., ::r].set(xr)
    up = jnp.pad(u, ((0, 0), (0, 0), (K - 1, K - 1)))
    Lout = Lu + K - 1
    wf = filt_up[::-1]
    out_full = sum(wf[k] * up[..., k:k + Lout] for k in range(K))
    y = r * out_full[..., pad_left:pad_left + r * T]

    # SnakeBeta
    a = jnp.exp(log_alpha)[None, :, None]
    b = jnp.exp(log_beta)[None, :, None]
    y = y + (1.0 / (b + 1e-9)) * jnp.sin(a * y) ** 2

    # DownSample1d: replicate pad, depthwise FIR, stride r
    Kd = filt_dn.shape[0]
    pl_d = Kd // 2 - 1 if Kd % 2 == 0 else Kd // 2
    pr_d = Kd // 2
    yp = jnp.pad(y, ((0, 0), (0, 0), (pl_d, pr_d)), mode="edge")
    out = sum(filt_dn[k] * yp[..., k::r][..., :T] for k in range(Kd))
    return out


# ----------------------------------------------------------------------------
if __name__ == "__main__":
    # Small but non-trivial: NT = 4 time tiles -> exercises first / interior /
    # last operator dedup and the scalar-prefetch operator index map.
    B, C, T = 2, 12, 392
    ratio, K = 2, 12  # up_ratio = down_ratio = 2, up/down kernel_size = 12

    key = jax.random.PRNGKey(0)
    kx, ka, kb = jax.random.split(key, 3)
    x = jax.random.normal(kx, (B, C, T), dtype=jnp.float32)
    log_alpha = 0.1 * jax.random.normal(ka, (C,), dtype=jnp.float32)
    log_beta = 0.1 * jax.random.normal(kb, (C,), dtype=jnp.float32)

    out = activation1d(x, log_alpha, log_beta,
                       up_ratio=ratio, down_ratio=ratio,
                       up_kernel_size=K, down_kernel_size=K,
                       time_tile=128, m_tile=512)
    out = jax.block_until_ready(out)

    filt = kaiser_sinc_filter1d(0.5 / ratio, 0.6 / ratio, K)
    ref = np.asarray(reference(x, log_alpha, log_beta,
                               jnp.asarray(filt), jnp.asarray(filt), ratio))
    got = np.asarray(out)
    assert got.shape == ref.shape == (B, C, T)

    # Tolerances account for bf16 MXU operands (f32 accumulation, f32 snake).
    np.testing.assert_allclose(got, ref, rtol=4e-2, atol=4e-2)
    assert float(np.mean(np.abs(got - ref))) < 1e-2

    print("KERNEL_OK")
</pallas_src>

<mosaic_0001>
module attributes {stable_mosaic.version = 11 : i64} {
  func.func @_activation1d_kernel(%arg0: i32, %arg1: i32, %arg2: memref<4xi32, #tpu.memory_space<smem>>, %arg3: memref<32x128xbf16, #tpu.memory_space<vmem>>, %arg4: memref<32x128xbf16, #tpu.memory_space<vmem>>, %arg5: memref<1x128x272xbf16, #tpu.memory_space<vmem>>, %arg6: memref<1x16x272xbf16, #tpu.memory_space<vmem>>, %arg7: memref<1x272x128xbf16, #tpu.memory_space<vmem>>, %arg8: memref<32x1xf32, #tpu.memory_space<vmem>>, %arg9: memref<32x1xf32, #tpu.memory_space<vmem>>, %arg10: memref<32x128xf32, #tpu.memory_space<vmem>>) attributes {dimension_semantics = [#tpu.dimension_semantics<parallel>, #tpu.dimension_semantics<parallel>], iteration_bounds = array<i64: 4, 1>, scalar_prefetch = 1 : i64, scratch_operands = 0 : i64, tpu.core_type = #tpu.core_type<tc>, window_params = [{transform_indices = @transform_0, window_bounds = array<i64: 32, 128>}, {transform_indices = @transform_1, window_bounds = array<i64: 32, 128>}, {transform_indices = @transform_2, window_bounds = array<i64: 1, 128, 272>}, {transform_indices = @transform_3, window_bounds = array<i64: 1, 16, 272>}, {transform_indices = @transform_4, window_bounds = array<i64: 1, 272, 128>}, {transform_indices = @transform_5, window_bounds = array<i64: 32, 1>}, {transform_indices = @transform_6, window_bounds = array<i64: 32, 1>}, {transform_indices = @transform_7, window_bounds = array<i64: 32, 128>}]} {
    %c0 = arith.constant 0 : index
    %c0_0 = arith.constant 0 : index
    %0 = vector.load %arg3[%c0, %c0_0] : memref<32x128xbf16, #tpu.memory_space<vmem>>, vector<32x128xbf16>
    %c0_1 = arith.constant 0 : index
    %c0_2 = arith.constant 0 : index
    %c0_3 = arith.constant 0 : index
    %1 = vector.load %arg5[%c0_1, %c0_2, %c0_3] : memref<1x128x272xbf16, #tpu.memory_space<vmem>>, vector<1x128x272xbf16>
    %2 = vector.shape_cast %1 : vector<1x128x272xbf16> to vector<128x272xbf16>
    %cst = arith.constant dense<0.000000e+00> : vector<32x272xf32>
    %3 = tpu.matmul %0, %2, %cst {dimension_numbers = #tpu.dot_dimension_numbers<[1], [0], [0], [1], [0, 0, 1, 1], [], []>} : vector<32x128xbf16>, vector<128x272xbf16>, vector<32x272xf32> -> vector<32x272xf32>
    %c0_4 = arith.constant 0 : index
    %c0_5 = arith.constant 0 : index
    %4 = vector.load %arg4[%c0_4, %c0_5] : memref<32x128xbf16, #tpu.memory_space<vmem>>, vector<32x16xbf16>
    %c0_6 = arith.constant 0 : index
    %c0_7 = arith.constant 0 : index
    %c0_8 = arith.constant 0 : index
    %5 = vector.load %arg6[%c0_6, %c0_7, %c0_8] : memref<1x16x272xbf16, #tpu.memory_space<vmem>>, vector<1x16x272xbf16>
    %6 = vector.shape_cast %5 : vector<1x16x272xbf16> to vector<16x272xbf16>
    %cst_9 = arith.constant dense<0.000000e+00> : vector<32x272xf32>
    %7 = tpu.matmul %4, %6, %cst_9 {dimension_numbers = #tpu.dot_dimension_numbers<[1], [0], [0], [1], [0, 0, 1, 1], [], []>} : vector<32x16xbf16>, vector<16x272xbf16>, vector<32x272xf32> -> vector<32x272xf32>
    %8 = arith.addf %3, %7 : vector<32x272xf32>
    %c0_10 = arith.constant 0 : index
    %c0_11 = arith.constant 0 : index
    %9 = vector.load %arg8[%c0_10, %c0_11] : memref<32x1xf32, #tpu.memory_space<vmem>>, vector<32x1xf32>
    %10 = vector.broadcast %9 : vector<32x1xf32> to vector<32x272xf32>
    %11 = arith.mulf %8, %10 : vector<32x272xf32>
    %12 = math.sin %11 : vector<32x272xf32>
    %13 = arith.mulf %12, %12 : vector<32x272xf32>
    %c0_12 = arith.constant 0 : index
    %c0_13 = arith.constant 0 : index
    %14 = vector.load %arg9[%c0_12, %c0_13] : memref<32x1xf32, #tpu.memory_space<vmem>>, vector<32x1xf32>
    %15 = vector.broadcast %14 : vector<32x1xf32> to vector<32x272xf32>
    %16 = arith.mulf %13, %15 : vector<32x272xf32>
    %17 = arith.addf %8, %16 : vector<32x272xf32>
    %18 = arith.truncf %17 : vector<32x272xf32> to vector<32x272xbf16>
    %c0_14 = arith.constant 0 : index
    %c0_15 = arith.constant 0 : index
    %c0_16 = arith.constant 0 : index
    %19 = vector.load %arg7[%c0_14, %c0_15, %c0_16] : memref<1x272x128xbf16, #tpu.memory_space<vmem>>, vector<1x272x128xbf16>
    %20 = vector.shape_cast %19 : vector<1x272x128xbf16> to vector<272x128xbf16>
    %cst_17 = arith.constant dense<0.000000e+00> : vector<32x128xf32>
    %21 = tpu.matmul %18, %20, %cst_17 {dimension_numbers = #tpu.dot_dimension_numbers<[1], [0], [0], [1], [0, 0, 1, 1], [], []>} : vector<32x272xbf16>, vector<272x128xbf16>, vector<32x128xf32> -> vector<32x128xf32>
    %c0_18 = arith.constant 0 : index
    %c0_19 = arith.constant 0 : index
    %22 = vector.load %arg10[%c0_18, %c0_19] : memref<32x128xf32, #tpu.memory_space<vmem>>, vector<32x128xf32>
    tpu.vector_store %arg10[%c0_18, %c0_19], %21 {strides = array<i32>} : memref<32x128xf32, #tpu.memory_space<vmem>>, vector<32x128xf32>,
    return
  }
  func.func @transform_0(%arg0: i32, %arg1: i32, %arg2: memref<4xi32, #tpu.memory_space<smem>>) -> (i32, i32) {
    %c0_i32 = arith.constant 0 : i32
    return %arg1, %arg0 : i32, i32
  }
  func.func @transform_1(%arg0: i32, %arg1: i32, %arg2: memref<4xi32, #tpu.memory_space<smem>>) -> (i32, i32) {
    %c1_i32 = arith.constant 1 : i32
    %0 = arith.addi %arg0, %c1_i32 : i32
    %c0_i32 = arith.constant 0 : i32
    return %arg1, %0 : i32, i32
  }
  func.func @transform_2(%arg0: i32, %arg1: i32, %arg2: memref<4xi32, #tpu.memory_space<smem>>) -> (i32, i32, i32) {
    %0 = arith.index_cast %arg0 : i32 to index
    %1 = memref.load %arg2[%0] : memref<4xi32, #tpu.memory_space<smem>>
    %c0_i32 = arith.constant 0 : i32
    %c0_i32_0 = arith.constant 0 : i32
    %c0_i32_1 = arith.constant 0 : i32
    return %1, %c0_i32, %c0_i32_0 : i32, i32, i32
  }
  func.func @transform_3(%arg0: i32, %arg1: i32, %arg2: memref<4xi32, #tpu.memory_space<smem>>) -> (i32, i32, i32) {
    %0 = arith.index_cast %arg0 : i32 to index
    %1 = memref.load %arg2[%0] : memref<4xi32, #tpu.memory_space<smem>>
    %c0_i32 = arith.constant 0 : i32
    %c0_i32_0 = arith.constant 0 : i32
    %c0_i32_1 = arith.constant 0 : i32
    return %1, %c0_i32, %c0_i32_0 : i32, i32, i32
  }
  func.func @transform_4(%arg0: i32, %arg1: i32, %arg2: memref<4xi32, #tpu.memory_space<smem>>) -> (i32, i32, i32) {
    %0 = arith.index_cast %arg0 : i32 to index
    %1 = memref.load %arg2[%0] : memref<4xi32, #tpu.memory_space<smem>>
    %c0_i32 = arith.constant 0 : i32
    %c0_i32_0 = arith.constant 0 : i32
    %c0_i32_1 = arith.constant 0 : i32
    return %1, %c0_i32, %c0_i32_0 : i32, i32, i32
  }
  func.func @transform_5(%arg0: i32, %arg1: i32, %arg2: memref<4xi32, #tpu.memory_space<smem>>) -> (i32, i32) {
    %c0_i32 = arith.constant 0 : i32
    %c0_i32_0 = arith.constant 0 : i32
    return %arg1, %c0_i32 : i32, i32
  }
  func.func @transform_6(%arg0: i32, %arg1: i32, %arg2: memref<4xi32, #tpu.memory_space<smem>>) -> (i32, i32) {
    %c0_i32 = arith.constant 0 : i32
    %c0_i32_0 = arith.constant 0 : i32
    return %arg1, %c0_i32 : i32, i32
  }
  func.func @transform_7(%arg0: i32, %arg1: i32, %arg2: memref<4xi32, #tpu.memory_space<smem>>) -> (i32, i32) {
    %c0_i32 = arith.constant 0 : i32
    return %arg1, %arg0 : i32, i32
  }
}

</mosaic_0001>

<bundles_post_ra>
// kernel: tpu_custom_call.1
= control target key start
LH: loop header
LB: loop body
LE: loop exit
PB: predicated region body
PF: predicated region fallthrough
CT: control target
= control target key end

     0   :  { %s4836_s0 = inlined_call_operand.vmem [shape: s32[4], index: 0, kind: input, shape index: {}]   ;;  %s4837_s1 = inlined_call_operand.vmem [shape: bf16[32,640], index: 1, kind: input, shape index: {}]   ;;  %s4838_s2 = inlined_call_operand.vmem [shape: bf16[32,640], index: 2, kind: input, shape index: {}]   ;;  %s4839_s3 = inlined_call_operand.vmem [shape: bf16[3,128,272], index: 3, kind: input, shape index: {}]   ;;  %s4840_s4 = inlined_call_operand.vmem [shape: bf16[3,16,272], index: 4, kind: input, shape index: {}]   ;;  %s4841_s5 = inlined_call_operand.vmem [shape: bf16[3,272,128], index: 5, kind: input, shape index: {}]   ;;  %s4842_s6 = inlined_call_operand.vmem [shape: f32[32,1], index: 6, kind: input, shape index: {}]   ;;  %s4843_s7 = inlined_call_operand.vmem [shape: f32[32,1], index: 7, kind: input, shape index: {}]   ;;  %s4844_s8 = inlined_call_operand.hbm [shape: f32[32,512], index: 8, kind: output, shape index: {}]  }
   0x1   :  { %4873 = sst [smem:[#allocation20_spill]] %s4837_s1  ;;  %s13_s29 = sshll.u32 %s4836_s0, 4  ;;  %s14_s29 = int_to_ptr.vmem [resolvable:$true] %s13_s29 }
   0x2   :  { %4874 = sst [smem:[#allocation21_spill]] %s4838_s2  ;;  %s3220_s30 = scalar_lea.vmem %s14_s29, 16 }
   0x3   :  { %4875 = sst [smem:[#allocation22_spill]] %s4842_s6  ;;  %p3221_p0 = scmp.ne.s32.totalorder %s14_s29, %s3220_s30 }
   0x4   :  { %p3225_p1 = scmp.lt.s32.totalorder %s14_s29, %s14_s29  ;;  %p3226_p2 = scmp.lt.s32.totalorder %s3220_s30, %s3220_s30 }
   0x6   :  { %p3227_p3 = por %p3226_p2, %p3225_p1 }
   0x8   :  { %p3228_p4 = pnand %p3227_p3, %p3221_p0 }
   0xa   :  { %3231 = shalt.err (!%p3228_p4)  }
   0xb   :  { %s3330_s9 = smov [#allocation3]  }
   0xc   :  { %16 = dma.vmem_to_smem %s14_s29, 16, %s3330_s9, [#allocation2] }
   0xd   :  { %3292 = dma.done.wait [#allocation2], 16 }
   0xe   :  { %3293 = vsyncadd [#allocation2], 4294967280 }
   0xf   :  { %18 = sfence }
  0x10   :  { %19 = vsyncpa [#allocation7], 0 }
  0x11   :  { %21 = vsyncpa [#allocation7 + $0x1], 0  ;;  %s3390_s10 = smov 0   ;;  %s3392_s11 = smov 0  }
  0x12   :  { %s3394_s0 = smov 0   ;;  %s3396_s12 = smov 0  }
  0x13   :  { %s3398_s13 = smov 0   ;;  %s3400_s14 = smov 0  }
  0x14   :  { %s3402_s15 = smov 0   ;;  %s3404_s16 = smov 0  }
  0x15 LB: > { %4876 = sst [smem:[#allocation10_spill]] %s3324_s15  ;;  %s2765_s17 = sadd.s32 4294967295, %s3328_s16   ;;  %s3328_s16 = sphi %s3404_s16, %s27_s16   ;;  %s3324_s15 = sphi %s3402_s15, %s4942_s15   ;;  %s3320_s14 = sphi %s3400_s14, %s4941_s14   ;;  %s3316_s13 = sphi %s3398_s13, %s4947_s13   ;;  %s3312_s12 = sphi %s3396_s12, %s4946_s12   ;;  %s3308_s0 = sphi %s3394_s0, %s4945_s0   ;;  %s3304_s11 = sphi %s3392_s11, %s4944_s11   ;;  %s3300_s10 = sphi %s3390_s10, %s4943_s10  }
  0x16   : > { %s2766_s18 = sadd.s32 4294967294, %s3328_s16   ;;  %s39_s19 = sadd.s32 1, %s3324_s15 }
  0x17   : > { %s48_s20 = sadd.s32 1, %s3316_s13  ;;  %p41_p5 = scmp.ge.s32.totalorder %s39_s19, 4 }
  0x18   : > { %p55_p6 = scmp.ne.s32.totalorder %s3316_s13, %s3312_s12  ;;  %p56_p7 = scmp.eq.s32.totalorder %s3328_s16, 0 }
  0x19   : > { %s78_s21 = sadd.s32 1, %s3308_s0  ;;  %p85_p9 = scmp.ne.s32.totalorder %s3308_s0, %s3304_s11 }
  0x1a   : > { %s3438_s22 = scalar_select %p41_p5, 0, %s39_s19  }
  0x1b   : > { %p3443_p8 = por %p56_p7, %p55_p6  ;;  %p3452_p12 = por %p85_p9, %p56_p7 }
  0x1c   : > { %4877 = sst [smem:[#allocation11_spill]] %s3438_s22  ;;  %s44_s24 = ssub.s32 %s3324_s15, %s3438_s22 }
  0x1d   : > { %s72_s25 = sadd.s32 1, %s3438_s22  ;;  %p46_p10 = scmp.eq.s32.totalorder %s44_s24, 0 }
  0x1e   : > { %s74_s26 = ssub.s32 %s39_s19, %s72_s25  ;;  %p253_p13 = scmp.eq.s32.totalorder %s2765_s17, 3 }
  0x1f   : > { %p76_p11 = scmp.eq.s32.totalorder %s74_s26, 0  ;;  %p258_p0 = scmp.ne.s32.totalorder %s3312_s12, %s3300_s10 }
  0x20   : > { %s3457_s28 = scalar_select %p46_p10, %s3316_s13, %s48_s20  }
  0x21   : > { %s3460_s29 = scalar_select %p76_p11, %s3308_s0, %s78_s21  }
  0x22   : > { %4880 = sst [smem:[#allocation12_spill]] %s3457_s28  ;;  %p259_p1 = scmp.eq.s32.totalorder %s2766_s18, 3 }
  0x23   : > { %p3467_p2 = por %p253_p13, %p55_p6  ;;  %p2770_p4 = scmp.ge.s32.totalorder %s3328_s16, 4 }
  0x24   : > { %p3471_p3 = por %p259_p1, %p258_p0 }
  0x25   : > { %293 = sbr.rel (%p2770_p4) target bundleno = 68 (0x44), region = 24 }
  0x2c   : > { %296 = sbr.rel (!%p3443_p8) target bundleno = 56 (0x38), region = 28  ;;  %s298_s17 = sand.u32 (%p3443_p8), 1, %s3316_s13  }
  0x2d   : > { %s2772_s19 = sshll.u32 (%p3443_p8), %s3324_s15, 2  ;;  %s2771_s18 = sshll.u32 (%p3443_p8), %s298_s17, 4 }
  0x2e   : > { %s4883_s1 = sld [smem:[#allocation20_spill]] (%p3443_p8)  ;;  %s300_s25 = scalar_lea.vmem (%p3443_p8), [#allocation4], %s2771_s18 }
  0x34   : > { %s305_s24 = scalar_lea.vmem %s4883_s1, %s2772_s19 }
  0x35   : > { %v321_v0 = vld [vmem:[%s305_s24] sm:$0xf]  ;;  %v323_v1 = vld [vmem:[%s305_s24 + $0x14] sm:$0xf]  ;;  %v325_v2 = vld [vmem:[%s305_s24 + $0x28] sm:$0xf] }
  0x36   : > { %322 = vst [vmem:[%s300_s25] sm:$0xf] %v321_v0  ;;  %324 = vst [vmem:[%s300_s25 + $0x4] sm:$0xf] %v323_v1  ;;  %v327_v3 = vld [vmem:[%s305_s24 + $0x3c] sm:$0xf] }
  0x37   : > { %326 = vst [vmem:[%s300_s25 + $0x8] sm:$0xf] %v325_v2  ;;  %328 = vst [vmem:[%s300_s25 + $0xc] sm:$0xf] %v327_v3 }
  0x38 PF: > { %359 = sbr.rel (!%p3452_p12) target bundleno = 68 (0x44), region = 69  ;;  %s361_s23 = sand.u32 (%p3452_p12), 1, %s3308_s0  }
  0x39   : > { %s2774_s26 = sshll.u32 (%p3452_p12), %s3324_s15, 2  ;;  %s2773_s17 = sshll.u32 (%p3452_p12), %s361_s23, 4 }
  0x3a   : > { %s4884_s2 = sld [smem:[#allocation21_spill]] (%p3452_p12)  ;;  %s363_s18 = scalar_lea.vmem (%p3452_p12), [#allocation5], %s2773_s17 }
  0x40   : > { %s2637_s21 = scalar_lea.vmem %s4884_s2, %s2774_s26 }
  0x41   : > { %v2775_v4 = vld [vmem:[%s2637_s21 + $0x4] sm:$0xf]  ;;  %v2776_v5 = vld [vmem:[%s2637_s21 + $0x18] sm:$0xf]  ;;  %v2777_v6 = vld [vmem:[%s2637_s21 + $0x2c] sm:$0xf] }
  0x42   : > { %386 = vst [vmem:[%s363_s18] sm:$0xf] %v2775_v4  ;;  %388 = vst [vmem:[%s363_s18 + $0x4] sm:$0xf] %v2776_v5  ;;  %v2778_v7 = vld [vmem:[%s2637_s21 + $0x40] sm:$0xf] }
  0x43   : > { %390 = vst [vmem:[%s363_s18 + $0x8] sm:$0xf] %v2777_v6  ;;  %392 = vst [vmem:[%s363_s18 + $0xc] sm:$0xf] %v2778_v7 }
  0x44 PF: > { %p2779_p5 = scmp.ge.s32.totalorder %s3328_s16, 1  ;;  %p452_p6 = scmp.lt.s32.totalorder %s3328_s16, 5 }
  0x46   : > { %p453_p7 = pnand %p2779_p5, %p452_p6 }
  0x48   : > { %456 = sbr.rel (%p453_p7) target bundleno = 918 (0x396), region = 122 }
  0x4f   : > { %s539_s27 = sld [smem:[#allocation3 + %s3320_s14]]  ;;  %v3331_v9 = vmov 0   ;;  %s466_s26 = sand.u32 1, %s3304_s11   ;;  %v2284_v13 = vld [vmem:[%s4843_s7] sm:$0xff]  ;;  %v2285_v14 = vld [vmem:[%s4843_s7 + $0x8] sm:$0xff]  ;;  %v2286_v15 = vld [vmem:[%s4843_s7 + $0x10] sm:$0xff] }
  0x50   : > { %s532_s24 = sld [smem:[#allocation3 + %s3320_s14]]  ;;  %676 = vmatprep.mubr.bf16.mxu1 %v3331_v9  ;;  %918 = vmatprep.mubr.bf16.mxu0 %v3331_v9  ;;  %s3501_s17 = sand.u32 1, %s3312_s12   ;;  %v2287_v16 = vld [vmem:[%s4843_s7 + $0x18] sm:$0xff]  ;;  %vm637_vm0 = vcmask 130048  }
  0x51   : > { %s4885_s6 = sld [smem:[#allocation22_spill]]  ;;  %s3506_s21 = sshll.u32 %s466_s26, 4  ;;  %3113 = vset.pattern.permute.xlu0 %v3331_v9  ;;  %3114 = vset.pattern.permute.xlu1 %v3331_v9 }
  0x52   : > { %s2780_s18 = sshll.u32 %s3501_s17, 4  ;;  %s4207_s15 = sld [smem:[#allocation3 + %s3320_s14]] }
  0x53   : > { %s3518_s26 = scalar_lea.vmem [#allocation4], %s2780_s18  ;;  %s2889_s2 = sshll.u32 %s3320_s14, 7 }
  0x54   : > { %v3149_v38 = vld [vmem:[%s3518_s26] sm:$0xff]   ;;  %v3152_v45 = vld [vmem:[%s3518_s26 + $0x8] sm:$0xff]   ;;  %s2782_s26 = sshll.u32 %s3501_s17, 5  ;;  %s4782_s19 = scalar_lea.hbm %s4844_s8, %s2889_s2 }
  0x55   : > { %p540_p8 = scmp.lt.s32.totalorder %s539_s27, 2  ;;  %s528_s11 = scalar_lea.vmem [#allocation6], %s2782_s26 }
  0x56   : > { %p533_p9 = scmp.lt.s32.totalorder %s532_s24, 2  ;;  %s2583_s14 = scalar_lea.sflag [#allocation7], %s3501_s17 }
  0x57   : > { %v988_v8 = vld [vmem:[%s4885_s6] sm:$0xff]  ;;  %v990_v10 = vld [vmem:[%s4885_s6 + $0x10] sm:$0xff]  ;;  %v989_v11 = vld [vmem:[%s4885_s6 + $0x8] sm:$0xff]  ;;  %s4949_s27 = smov (!%p540_p8, %s539_s27), 2 }
  0x58   : > { %994 = vperm.xlu0 %3113, %v988_v8   ;;  %1004 = vperm.xlu1 %3114, %v990_v10   ;;  %v991_v12 = vld [vmem:[%s4885_s6 + $0x18] sm:$0xff]  ;;  %s4951_s24 = smov (!%p533_p9, %s532_s24), 2  ;;  %s2981_s23 = smul.u32 24, %s4949_s27 }
  0x59   : > { %s2980_s1 = smul.u32 192, %s4951_s24  ;;  %s4886_s24 = scalar_lea.vmem [#allocation5], %s3506_s21 }
  0x5a   : > { %s544_s6 = scalar_lea.vmem %s4840_s4, %s2981_s23  ;;  %v3121_v19 = vld [vmem:[%s4886_s24] sm:$0xff]   ;;  %p547_p10 = scmp.lt.s32.totalorder %s4207_s15, 2 }
  0x5b   : > { %v3115_v17 = vld [vmem:[%s544_s6 + $0x4] ss:$12 sps:$4 sm:$0xff]   ;;  %s3538_s27 = scalar_lea.vmem %s4839_s3, %s2980_s1  ;;  %v3119_v20 = vld [vmem:[%s544_s6] ss:$12 sps:$4 sm:$0xff]   ;;  %v3122_v22 = vld [vmem:[%s544_s6 + $0x8] ss:$12 sps:$4 sm:$0xff]   ;;  %s4887_s6 = smov %s4886_s24 }
  0x5c   : > { %999 = vperm.xlu0 %3113, %v989_v11   ;;  %1009 = vperm.xlu1 %3114, %v991_v12   ;;  %v3117_v18 = vld [vmem:[%s3538_s27 + $0x4] ss:$12 sps:$4 sm:$0xff]   ;;  %v3120_v21 = vld [vmem:[%s3538_s27] ss:$12 sps:$4 sm:$0xff]   ;;  %v3123_v23 = vld [vmem:[%s3538_s27 + $0x1c] ss:$12 sps:$4 sm:$0xff]  }
  0x5d   : > { %644 = vmatprep.subr.bf16.mxu1 %v3115_v17  ;;  %886 = vmatprep.subr.bf16.mxu0 %v3117_v18  ;;  %v3125_v24 = vld [vmem:[%s3538_s27 + $0x18] ss:$12 sps:$4 sm:$0xff]   ;;  %v3126_v25 = vld [vmem:[%s3538_s27 + $0x34] ss:$12 sps:$4 sm:$0xff]   ;;  %v3128_v26 = vld [vmem:[%s3538_s27 + $0x30] ss:$12 sps:$4 sm:$0xff]  }
  0x5e   : > { %645 = vmatpush1.bf16.msra.mxu1 %v3119_v20  ;;  %887 = vmatpush1.bf16.msra.mxu0 %v3120_v21  ;;  %v3130_v27 = vld [vmem:[%s3538_s27 + $0x4c] ss:$12 sps:$4 sm:$0xff]   ;;  %v3136_v28 = vld [vmem:[%s3538_s27 + $0x8] ss:$12 sps:$4 sm:$0xff]   ;;  %v3133_v31 = vld [vmem:[%s3538_s27 + $0x64] ss:$12 sps:$4 sm:$0xff]  }
  0x5f   : > { %2936 = vmatprep.subr.bf16.mxu1 %v3122_v22  ;;  %888 = vmatprep.subr.bf16.mxu0 %v3123_v23  ;;  %v3129_v29 = vld [vmem:[%s4887_s6 + $0x8] sm:$0xff]   ;;  %v3139_v34 = vld [vmem:[%s3538_s27 + $0x78] ss:$12 sps:$4 sm:$0xff]   ;;  %v3141_v36 = vld [vmem:[%s3538_s27 + $0x94] ss:$12 sps:$4 sm:$0xff]   ;;  %s4953_s15 = smov (!%p547_p10, %s4207_s15), 2 }
  0x60   : > { %2290 = vperm.xlu0 %3113, %v2284_v13   ;;  %2295 = vperm.xlu1 %3114, %v2285_v14   ;;  %v3132_v30 = vld [vmem:[%s3538_s27 + $0x48] ss:$12 sps:$4 sm:$0xff]   ;;  %v3135_v32 = vld [vmem:[%s3538_s27 + $0x60] ss:$12 sps:$4 sm:$0xff]   ;;  %v3143_v37 = vld [vmem:[%s3538_s27 + $0x90] ss:$12 sps:$4 sm:$0xff]  }
  0x61   : > { %2791 = vmatmul.mubr.msk.bf16.vlgmr.msra.gmra.mrb[0].mxu1 %vm637_vm0, %v3121_v19  ;;  %v3137_v33 = vld [vmem:[%s3538_s27 + $0x7c] ss:$12 sps:$4 sm:$0xff]   ;;  %v3140_v35 = vld [vmem:[%s3538_s27 + $0x20] ss:$12 sps:$4 sm:$0xff]   ;;  %v3144_v39 = vld [vmem:[%s3538_s27 + $0x38] ss:$12 sps:$4 sm:$0xff]  }
  0x62   : > { %2937 = vmatpush3.bf16.msra.mxu1 %v3122_v22  ;;  %889 = vmatpush1.bf16.msra.mxu0 %v3125_v24  ;;  %v3145_v40 = vld [vmem:[%s3538_s27 + $0xac] ss:$12 sps:$4 sm:$0xff]   ;;  %v3147_v41 = vld [vmem:[%s3538_s27 + $0xa8] ss:$12 sps:$4 sm:$0xff]   ;;  %v3148_v42 = vld [vmem:[%s3538_s27 + $0x50] ss:$12 sps:$4 sm:$0xff]  }
  0x63   : > { %890 = vmatprep.subr.bf16.mxu0 %v3126_v25  ;;  %686 = vmatprep.mubr.bf16.mxu1 %v3331_v9  ;;  %v3150_v43 = vld [vmem:[%s3538_s27 + $0x68] ss:$12 sps:$4 sm:$0xff]   ;;  %v3151_v44 = vld [vmem:[%s3538_s27 + $0x80] ss:$12 sps:$4 sm:$0xff]   ;;  %v3153_v46 = vld [vmem:[%s3538_s27 + $0x98] ss:$12 sps:$4 sm:$0xff]  }
  0x64   : > { %2300 = vperm.xlu0 %3113, %v2286_v15   ;;  %2305 = vperm.xlu1 %3114, %v2287_v16   ;;  %v3154_v47 = vld [vmem:[%s3538_s27 + $0xb0] ss:$12 sps:$4 sm:$0xff]   ;;  %s2982_s22 = smul.u32 136, %s4953_s15  ;;  %s2598_s1 = sshll.u32 %s528_s11, 4  ;;  %s4777_s1 = int_to_ptr.vmem [resolvable:$true] %s2598_s1 }
  0x65   : > { %2942 = vmatprep.subr.bf16.mxu1 %v3136_v28  ;;  %s3232_s25 = scalar_lea.vmem %s4777_s1, 512  ;;  %s3338_s27 = smov [#allocation6]  }
  0x66   : > { %891 = vmatpush1.bf16.msra.mxu0 %v3128_v26  ;;  %s4265_s23 = scalar_lea.vmem %s4841_s5, %s2982_s22  ;;  %p3233_p11 = scmp.ne.s32.totalorder %s4777_s1, %s3232_s25 }
  0x67   : > { %892 = vmatprep.subr.bf16.mxu0 %v3130_v27  ;;  %s3236_s24 = sshll.u32 %s3338_s27, 4  ;;  %s3237_s24 = int_to_ptr.vmem [resolvable:$false] %s3236_s24 }
  0x68   : > { %p3234_p12 = pnand %p3233_p11, %p3467_p2  ;;  %s3238_s6 = scalar_lea.vmem %s3237_s24, 1024 }
  0x69   : > { %2792 = vmatmul.mubr.msk.bf16.gmra.mrb[4].mxu1 %vm637_vm0, %v3129_v29  ;;  %p3239_p0 = scmp.lt.s32.totalorder %s4777_s1, %s3237_s24  ;;  %p3240_p1 = scmp.lt.s32.totalorder %s3238_s6, %s3232_s25 }
  0x6a   : > { %893 = vmatpush1.bf16.msra.mxu0 %v3132_v30  ;;  %2938 = vmatprep.mubr.msk.bf16.mxu1 %vm637_vm0, %v3121_v19  ;;  %p3235_p13 = pneg %p3234_p12 }
  0x6b   : > { %894 = vmatprep.subr.bf16.mxu0 %v3133_v31  ;;  %p3241_p4 = por %p3240_p1, %p3239_p0 }
  0x6d   : > { %p3242_p5 = pnand %p3241_p4, %p3235_p13 }
  0x6e   : > { %895 = vmatpush1.bf16.msra.mxu0 %v3135_v32 }
  0x6f   : > { %896 = vmatprep.subr.bf16.mxu0 %v3137_v33 }
  0x71   : > { %2939 = vmatmul.mubr.msk.bf16.vlgmr.msra.gmra.mrb[8].mxu1 %vm637_vm0, %v3129_v29 }
  0x72   : > { %2943 = vmatpush3.bf16.msra.mxu1 %v3136_v28  ;;  %897 = vmatpush1.bf16.msra.mxu0 %v3139_v34 }
  0x73   : > { %2944 = vmatprep.subr.bf16.mxu1 %v3140_v35  ;;  %898 = vmatprep.subr.bf16.mxu0 %v3141_v36 }
  0x74   : > { %2958 = vmatprep.mubr.bf16.mxu1 %v3149_v38 }
  0x76   : > { %2945 = vmatpush3.bf16.msra.mxu1 %v3140_v35  ;;  %899 = vmatpush1.bf16.msra.mxu0 %v3143_v37 }
  0x77   : > { %2946 = vmatprep.subr.bf16.mxu1 %v3144_v39  ;;  %900 = vmatprep.subr.bf16.mxu0 %v3145_v40 }
  0x7a   : > { %2947 = vmatpush3.bf16.msra.mxu1 %v3144_v39  ;;  %901 = vmatpush1.bf16.msra.mxu0 %v3147_v41  ;;  %v4862_v41 = vmov 683565275  }
  0x7b   : > { %2948 = vmatprep.subr.bf16.mxu1 %v3148_v42 }
  0x7d   : > { %919 = vmatmul.mubr.bf16.vlgmr.msra.gmra.mrb[0].mxu0 %v3149_v38 }
  0x7e   : > { %2949 = vmatpush3.bf16.msra.mxu1 %v3148_v42  ;;  %928 = vmatprep.mubr.bf16.mxu0 %v3331_v9 }
  0x7f   : > { %2950 = vmatprep.subr.bf16.mxu1 %v3150_v43 }
  0x82   : > { %2951 = vmatpush3.bf16.msra.mxu1 %v3150_v43  ;;  %v4849_v43 = vmov 2475754826  }
  0x83   : > { %2952 = vmatprep.subr.bf16.mxu1 %v3151_v44 }
  0x85   : > { %929 = vmatmul.mubr.bf16.gmra.mrb[4].mxu0 %v3152_v45 }
  0x86   : > { %2953 = vmatpush3.bf16.msra.mxu1 %v3151_v44 }
  0x87   : > { %2954 = vmatprep.subr.bf16.mxu1 %v3153_v46 }
  0x8a   : > { %2955 = vmatpush3.bf16.msra.mxu1 %v3153_v46  ;;  %v4851_v46 = vmov 2131351028  }
  0x8b   : > { %2956 = vmatprep.subr.bf16.mxu1 %v3154_v47 }
  0x8e   : > { %2957 = vmatpush3.bf16.msra.mxu1 %v3154_v47 }
  0x91   : > { %2959 = vmatmul.mubr.bf16.vlgmr.msra.gmra.mrb[8].mxu1 %v3152_v45 }
  0xd7   : > { %v3584_v56 = vpop.permute.xlu0 %994 }
  0xdb   : > { %v3596_v1 = vpop.permute.xlu0 %999 }
  0xdc   : > { %4889 = vst [vmem:[#allocation14_spill] sm:$0xff] %v3596_v1 }
 0x134   : > { %v678_v48 = vpop.f32.mrb[0].mxu1 }
 0x135   : > { %v680_v49 = vpop.f32.mrb[1].mxu1 }
 0x136   : > { %v682_v50 = vpop.f32.mrb[2].mxu1 }
 0x137   : > { %v684_v51 = vpop.f32.mrb[3].mxu1 }
 0x13c   : > { %v3576_v52 = vpop.f32.mrb[4].mxu1 }
 0x13d   : > { %v3578_v53 = vpop.f32.mrb[5].mxu1 }
 0x13e   : > { %v3580_v54 = vpop.f32.mrb[6].mxu1 }
 0x13f   : > { %v3582_v55 = vpop.f32.mrb[7].mxu1 }
 0x150   : > { %v920_v57 = vpop.f32.mrb[0].mxu0 }
 0x151   : > { %v3586_v58 = vadd.f32 %v920_v57, %v678_v48  ;;  %v922_v59 = vpop.f32.mrb[1].mxu0  ;;  %v4853_v48 = vmov 2102212464  }
 0x152   : > { %v3588_v60 = vadd.f32 %v922_v59, %v680_v49  ;;  %v924_v61 = vpop.f32.mrb[2].mxu0 }
 0x153   : > { %v3592_v62 = vmul.f32 %v3584_v56, %v3586_v58  ;;  %v3594_v63 = vadd.f32 %v924_v61, %v682_v50  ;;  %v926_v0 = vpop.f32.mrb[3].mxu0  ;;  %v4860_v50 = vmov 920167782  }
 0x154   : > { %v3600_v2 = vmul.f32 %v3584_v56, %v3588_v60  ;;  %v3602_v3 = vadd.f32 %v926_v0, %v684_v51 }
 0x155   : > { %4888 = vst [vmem:[#allocation13_spill] sm:$0xff] %v3594_v63  ;;  %v1024_v4 = vand.u32 2147483647, %v3592_v62  ;;  %v1027_v5 = vand.u32 2139095040, %v3592_v62  ;;  %v3608_v6 = vmul.f32 %v3596_v1, %v3594_v63 }
 0x156   : > { %4890 = vst [vmem:[#allocation15_spill] sm:$0xff] %v3602_v3  ;;  %v4855_v7 = vand.u32 2147483647, %v3600_v2  ;;  %v1131_v8 = vand.u32 2139095040, %v3600_v2  ;;  %v3620_v16 = vmul.f32 %v3596_v1, %v3602_v3 }
 0x157   : > { %v1028_v9 = vshrl.u32 %v1027_v5, 23  ;;  %v1031_v10 = vand.u32 8388607, %v1024_v4  ;;  %v1339_v13 = vand.u32 2139095040, %v3608_v6  ;;  %v4848_v15 = vand.u32 2147483647, %v3608_v6 }
 0x158   : > { %v1132_v11 = vshrl.u32 %v1131_v8, 23  ;;  %v1135_v12 = vand.u32 8388607, %v4855_v7  ;;  %v3622_v20 = vpop.f32.mrb[4].mxu0  ;;  %v1443_v27 = vand.u32 2139095040, %v3620_v16 }
 0x159   : > { %v2821_v14 = vadd.s32 4294967169, %v1028_v9  ;;  %v1032_v17 = vor.u32 8388608, %v1031_v10  ;;  %v1340_v19 = vshrl.u32 %v1339_v13, 23  ;;  %v3626_v25 = vand.u32 8388607, %v4848_v15  ;;  %v3628_v26 = vpop.f32.mrb[5].mxu0 }
 0x15a   : > { %v2825_v18 = vadd.s32 4294967169, %v1132_v11  ;;  %v1136_v22 = vor.u32 8388608, %v1135_v12  ;;  %v3631_v28 = vpop.f32.mrb[6].mxu0  ;;  %v3648_v45 = vshrl.u32 %v1443_v27, 23  ;;  %v4856_v8 = vmov 1326507024  }
 0x15b   : > { %v1034_v21 = vadd.s32 1, %v2821_v14  ;;  %v2833_v24 = vadd.s32 4294967169, %v1340_v19  ;;  %v3633_v30 = vshll.u32 %v1032_v17, 8  ;;  %v3635_v31 = vpop.f32.mrb[7].mxu0  ;;  %v1344_v38 = vor.u32 8388608, %v3626_v25 }
 0x15c   : > { %v1138_v23 = vadd.s32 1, %v2825_v18  ;;  %v3637_v35 = vshll.u32 %v1136_v22, 8 }
 0x15d   : > { %vm1035_vm1 = vcmp.gt.s32.totalorder %v1034_v21, 0  ;;  %v3644_v39 = vadd.s32 1, %v2833_v24 }
 0x15e   : > { %v1036_v29 = vsel %vm1035_vm1, %v1034_v21, 0  ;;  %vm1139_vm2 = vcmp.gt.s32.totalorder %v1138_v23, 0 }
 0x15f   : > { %v1037_v32 = vshrl.u32 %v1036_v29, 5  ;;  %v1038_v33 = vand.u32 31, %v1036_v29  ;;  %v1140_v34 = vsel %vm1139_vm2, %v1138_v23, 0  ;;  %vm1347_vm7 = vcmp.gt.s32.totalorder %v3644_v39, 0 }
 0x160   : > { %v3639_v36 = vshrl.u32 %v1140_v34, 5  ;;  %v3641_v37 = vand.u32 31, %v1140_v34 }
 0x161   : > { %v1039_v40 = vsub.s32 32, %v1038_v33  ;;  %v1041_v42 = vshll.u32 %v4862_v41, %v1038_v33  ;;  %v1044_v44 = vshll.u32 %v4849_v43, %v1038_v33  ;;  %v1047_v47 = vshll.u32 %v4851_v46, %v1038_v33 }
 0x162   : > { %v1050_v49 = vshll.u32 %v4853_v48, %v1038_v33  ;;  %v1053_v51 = vshll.u32 %v4860_v50, %v1038_v33  ;;  %vm1056_vm3 = vcmp.lt.s32.totalorder %v1037_v32, 1  ;;  %vm1057_vm4 = vcmp.lt.s32.totalorder %v1037_v32, 2 }
 0x163   : > { %v1042_v57 = vshrl.u32 %v4849_v43, %v1039_v40  ;;  %v1045_v59 = vshrl.u32 %v4851_v46, %v1039_v40  ;;  %v1048_v61 = vshrl.u32 %v4853_v48, %v1039_v40  ;;  %v1040_v0 = vshrl.u32 %v4862_v41, %v1039_v40 }
 0x164   : > { %v1051_v5 = vshrl.u32 %v4860_v50, %v1039_v40  ;;  %v1054_v9 = vshrl.u32 %v4856_v8, %v1039_v40  ;;  %vm1058_vm5 = vcmp.lt.s32.totalorder %v1037_v32, 3  ;;  %v1143_v13 = vsub.s32 32, %v3641_v37 }
 0x165   : > { %v1043_v10 = vor.u32 %v1042_v57, %v1041_v42  ;;  %v1046_v11 = vor.u32 %v1045_v59, %v1044_v44  ;;  %v1049_v12 = vor.u32 %v1048_v61, %v1047_v47  ;;  %vm1059_vm6 = vcmp.lt.s32.totalorder %v1037_v32, 4 }
 0x166   : > { %v1052_v14 = vor.u32 %v1051_v5, %v1050_v49  ;;  %v1055_v17 = vor.u32 %v1054_v9, %v1053_v51  ;;  %v1145_v18 = vshll.u32 %v4862_v41, %v3641_v37  ;;  %v1148_v33 = vshll.u32 %v4849_v43, %v3641_v37 }
 0x167   : > { %v1060_v19 = vsel %vm1056_vm3, %v1040_v0, %v1043_v10  ;;  %v1061_v21 = vsel %vm1059_vm6, %v1049_v12, 2102212464  ;;  %v1064_v22 = vsel %vm1056_vm3, %v1043_v10, %v1046_v11  ;;  %v1068_v23 = vsel %vm1056_vm3, %v1046_v11, %v1049_v12 }
 0x168   : > { %v1062_v24 = vsel %vm1058_vm5, %v1046_v11, %v1061_v21  ;;  %v1065_v27 = vsel %vm1059_vm6, %v1052_v14, 920167782  ;;  %v1069_v29 = vsel %vm1059_vm6, %v1055_v17, 1326507024  ;;  %v1144_v42 = vshrl.u32 %v4862_v41, %v1143_v13 }
 0x169   : > { %v1066_v34 = vsel %vm1058_vm5, %v1049_v12, %v1065_v27  ;;  %v1070_v40 = vsel %vm1058_vm5, %v1052_v14, %v1069_v29  ;;  %v1146_v44 = vshrl.u32 %v4849_v43, %v1143_v13  ;;  %v1063_v47 = vsel %vm1057_vm4, %v1060_v19, %v1062_v24 }
 0x16a   : > { %v1067_v49 = vsel %vm1057_vm4, %v1064_v22, %v1066_v34  ;;  %v1071_v51 = vsel %vm1057_vm4, %v1068_v23, %v1070_v40  ;;  %v1149_v57 = vshrl.u32 %v4851_v46, %v1143_v13  ;;  %v1151_v11 = vshll.u32 %v4851_v46, %v3641_v37 }
 0x16b   : > { %v3678_v59 = vmul.u32.u64.low %v3633_v30, %v1071_v51  ;;  %v3679_v61 = vmul.u32.u64.high %v3633_v30, %v1071_v51, %v3678_v59  ;;  %v3682_v0 = vmul.u32.u64.low %v3633_v30, %v1067_v49  ;;  %v3683_v5 = vmul.u32.u64.high %v3633_v30, %v1067_v49, %v3682_v0 }
 0x16c   : > { %v1147_v9 = vor.u32 %v1146_v44, %v1145_v18  ;;  %v1150_v10 = vor.u32 %v1149_v57, %v1148_v33  ;;  %v1152_v12 = vshrl.u32 %v4853_v48, %v1143_v13  ;;  %v1079_v32 = vmul.u32 %v3633_v30, %v1063_v47 }
 0x16d   : > { %v1154_v14 = vshll.u32 %v4853_v48, %v3641_v37  ;;  %v1155_v17 = vshrl.u32 %v4860_v50, %v1143_v13  ;;  %v1158_v19 = vshrl.u32 %v4856_v8, %v1143_v13  ;;  %v1157_v22 = vshll.u32 %v4860_v50, %v3641_v37 }
 0x16e   : > { %v1153_v21 = vor.u32 %v1152_v12, %v1151_v11  ;;  %vm1160_vm8 = vcmp.lt.s32.totalorder %v3639_v36, 1  ;;  %vm1161_vm9 = vcmp.lt.s32.totalorder %v3639_v36, 2  ;;  %vm1081_vm10 = vc.u32 %v3679_v61, %v3682_v0 }
 0x16f   : > { %v1082_v30 = vadd.s32 1, %v3683_v5  ;;  %v1156_v18 = vor.u32 %v1155_v17, %v1154_v14  ;;  %vm1162_vm11 = vcmp.lt.s32.totalorder %v3639_v36, 3  ;;  %v1159_v23 = vor.u32 %v1158_v19, %v1157_v22 }
 0x170   : > { %vm1163_vm12 = vcmp.lt.s32.totalorder %v3639_v36, 4  ;;  %v1164_v13 = vsel %vm1160_vm8, %v1144_v42, %v1147_v9  ;;  %v1168_v24 = vsel %vm1160_vm8, %v1147_v9, %v1150_v10  ;;  %v1172_v33 = vsel %vm1160_vm8, %v1150_v10, %v1153_v21 }
 0x171   : > { %v1083_v27 = vsel %vm1081_vm10, %v1082_v30, %v3683_v5  ;;  %v1165_v37 = vsel %vm1163_vm12, %v1153_v21, 2102212464  ;;  %v1169_v29 = vsel %vm1163_vm12, %v1156_v18, 920167782  ;;  %v1173_v47 = vsel %vm1163_vm12, %v1159_v23, 1326507024 }
 0x172   : > { %v1084_v34 = vadd.s32 %v1083_v27, %v1079_v32  ;;  %v1166_v40 = vsel %vm1162_vm11, %v1150_v10, %v1165_v37  ;;  %v1170_v44 = vsel %vm1162_vm11, %v1153_v21, %v1169_v29  ;;  %v1174_v57 = vsel %vm1162_vm11, %v1156_v18, %v1173_v47 }
 0x173   : > { %v1167_v49 = vsel %vm1161_vm9, %v1164_v13, %v1166_v40  ;;  %v1171_v51 = vsel %vm1161_vm9, %v1168_v24, %v1170_v44  ;;  %v1348_v42 = vsel %vm1347_vm7, %v3644_v39, 0  ;;  %v1175_v5 = vsel %vm1161_vm9, %v1172_v33, %v1174_v57 }
 0x174   : > { %v1085_v59 = vadd.s32 536870912, %v1084_v34  ;;  %v3714_v9 = vmul.u32.u64.low %v3637_v35, %v1171_v51  ;;  %v3715_v10 = vmul.u32.u64.high %v3637_v35, %v1171_v51, %v3714_v9  ;;  %v1349_v32 = vshrl.u32 %v1348_v42, 5 }
 0x175   : > { %v3719_v11 = vmul.u32.u64.low %v3637_v35, %v1175_v5  ;;  %v3720_v12 = vmul.u32.u64.high %v3637_v35, %v1175_v5, %v3719_v11  ;;  %v1350_v17 = vand.u32 31, %v1348_v42  ;;  %v1183_v19 = vmul.u32 %v3637_v35, %v1167_v49 }
 0x176   : > { %v3722_v14 = vshrl.u32 %v1085_v59, 30  ;;  %v3727_v39 = vshll.u32 %v1344_v38, 8  ;;  %v2837_v36 = vadd.s32 4294967169, %v3648_v45  ;;  %v1186_v22 = vadd.s32 1, %v3715_v10 }
 0x177   : > { %v1351_v30 = vsub.s32 32, %v1350_v17  ;;  %vm1368_vm13 = vcmp.lt.s32.totalorder %v1349_v32, 1  ;;  %vm1185_vm14 = vc.u32 %v3720_v12, %v3714_v9  ;;  %v1353_v18 = vshll.u32 %v4862_v41, %v1350_v17 }
 0x178   : > { %v1087_v21 = vshll.u32 %v3722_v14, 30  ;;  %v1356_v23 = vshll.u32 %v4849_v43, %v1350_v17  ;;  %vm1369_vm15 = vcmp.lt.s32.totalorder %v1349_v32, 2  ;;  %vm1370_vm1 = vcmp.lt.s32.totalorder %v1349_v32, 3 }
 0x179   : > { %v1187_v35 = vsel %vm1185_vm14, %v1186_v22, %v3715_v10  ;;  %v1354_v38 = vshrl.u32 %v4849_v43, %v1351_v30  ;;  %v1359_v45 = vshll.u32 %v4851_v46, %v1350_v17  ;;  %v1357_v24 = vshrl.u32 %v4851_v46, %v1351_v30 }
 0x17a   : > { %v3736_v25 = vsub.s32 %v1084_v34, %v1087_v21  ;;  %v1188_v13 = vadd.s32 %v1187_v35, %v1183_v19  ;;  %v1360_v27 = vshrl.u32 %v4853_v48, %v1351_v30  ;;  %v1362_v37 = vshll.u32 %v4853_v48, %v1350_v17 }
 0x17b   : > { %v1355_v33 = vor.u32 %v1354_v38, %v1353_v18  ;;  %v1363_v40 = vshrl.u32 %v4860_v50, %v1351_v30  ;;  %v1365_v34 = vshll.u32 %v4860_v50, %v1350_v17  ;;  %v1358_v47 = vor.u32 %v1357_v24, %v1356_v23 }
 0x17c   : > { %v1090_v29 = vsub.s32 0, %v3736_v25  ;;  %v1189_v44 = vadd.s32 536870912, %v1188_v13  ;;  %v1361_v49 = vor.u32 %v1360_v27, %v1359_v45  ;;  %v1366_v51 = vshrl.u32 %v4856_v8, %v1351_v30 }
 0x17d   : > { %v1352_v42 = vshrl.u32 %v4862_v41, %v1351_v30  ;;  %v1364_v59 = vor.u32 %v1363_v40, %v1362_v37  ;;  %vm1371_vm2 = vcmp.lt.s32.totalorder %v1349_v32, 4  ;;  %v1376_v19 = vsel %vm1368_vm13, %v1355_v33, %v1358_v47 }
 0x17e   : > { %v2822_v57 = vmin.u32 %v1090_v29, %v3736_v25  ;;  %v3750_v5 = vshrl.u32 %v1189_v44, 30  ;;  %v1367_v10 = vor.u32 %v1366_v51, %v1365_v34  ;;  %v1373_v11 = vsel %vm1371_vm2, %v1361_v49, 2102212464 }
 0x17f   : > { %v1377_v22 = vsel %vm1371_vm2, %v1364_v59, 920167782  ;;  %v1380_v17 = vsel %vm1368_vm13, %v1358_v47, %v1361_v49  ;;  %v1450_v18 = vadd.s32 1, %v2837_v36  ;;  %v1372_v35 = vsel %vm1368_vm13, %v1352_v42, %v1355_v33 }
 0x180   : > { %v1092_v21 = vclz %v2822_v57  ;;  %v1191_v23 = vshll.u32 %v3750_v5, 30  ;;  %v1378_v38 = vsel %vm1370_vm1, %v1361_v49, %v1377_v22  ;;  %v1381_v30 = vsel %vm1371_vm2, %v1367_v10, 1326507024 }
 0x181   : > { %v1374_v24 = vsel %vm1370_vm1, %v1358_v47, %v1373_v11  ;;  %v1379_v27 = vsel %vm1369_vm15, %v1376_v19, %v1378_v38  ;;  %v1382_v37 = vsel %vm1370_vm1, %v1364_v59, %v1381_v30  ;;  %vm1451_vm4 = vcmp.gt.s32.totalorder %v1450_v18, 0 }
 0x182   : > { %v2823_v45 = vadd.s32 4294967294, %v1092_v21  ;;  %v3760_v29 = vsub.s32 %v1188_v13, %v1191_v23  ;;  %v1383_v40 = vsel %vm1369_vm15, %v1380_v17, %v1382_v37  ;;  %v1375_v49 = vsel %vm1369_vm15, %v1372_v35, %v1374_v24 }
 0x183   : > { %v3764_v36 = vmul.u32.u64.low %v3727_v39, %v1379_v27  ;;  %v3765_v34 = vmul.u32.u64.high %v3727_v39, %v1379_v27, %v3764_v36  ;;  %v3769_v33 = vmul.u32.u64.low %v3727_v39, %v1383_v40  ;;  %v3770_v44 = vmul.u32.u64.high %v3727_v39, %v1383_v40, %v3769_v33 }
 0x184   : > { %vm2824_vm3 = vcmp.lt.s32.totalorder %v2823_v45, 0  ;;  %v1194_v47 = vsub.s32 0, %v3760_v29  ;;  %v4847_v13 = vand.u32 2147483647, %v3620_v16  ;;  %v1452_v51 = vsel %vm1451_vm4, %v1450_v18, 0 }
 0x185   : > { %v3775_v57 = vsel %vm2824_vm3, 0, %v2823_v45  ;;  %v1394_v59 = vadd.s32 1, %v3765_v34  ;;  %v1454_v10 = vand.u32 31, %v1452_v51  ;;  %v1391_v11 = vmul.u32 %v3727_v39, %v1375_v49 }
 0x186   : > { %v2826_v42 = vmin.u32 %v1194_v47, %v3760_v29  ;;  %vm1393_vm5 = vc.u32 %v3770_v44, %v3764_v36  ;;  %v1100_v19 = vsub.s32 4294967266, %v3775_v57  ;;  %v1447_v22 = vand.u32 8388607, %v4847_v13 }
 0x187   : > { %v1395_v32 = vsel %vm1393_vm5, %v1394_v59, %v3765_v34  ;;  %v1455_v18 = vsub.s32 32, %v1454_v10  ;;  %v1080_v38 = vadd.s32 %v3682_v0, %v3679_v61  ;;  %v1096_v40 = vsub.s32 32, %v3775_v57 }
 0x188   : > { %v1196_v21 = vclz %v2826_v42  ;;  %v1396_v17 = vadd.s32 %v1395_v32, %v1391_v11  ;;  %v1101_v30 = vadd.s32 127, %v1100_v19  ;;  %v1448_v39 = vor.u32 8388608, %v1447_v22 }
 0x189   : > { %v1458_v27 = vshrl.u32 %v4849_v43, %v1455_v18  ;;  %v1461_v37 = vshrl.u32 %v4851_v46, %v1455_v18  ;;  %v1453_v34 = vshrl.u32 %v1452_v51, 5  ;;  %v1457_v33 = vshll.u32 %v4862_v41, %v1454_v10 }
 0x18a   : > { %v2827_v23 = vadd.s32 4294967294, %v1196_v21  ;;  %v1397_v35 = vadd.s32 536870912, %v1396_v17  ;;  %v1464_v47 = vshrl.u32 %v4853_v48, %v1455_v18  ;;  %v1460_v49 = vshll.u32 %v4849_v43, %v1454_v10 }
 0x18b   : > { %v1467_v42 = vshrl.u32 %v4860_v50, %v1455_v18  ;;  %v1102_v59 = vshll.u32 %v1101_v30, 23  ;;  %v1463_v11 = vshll.u32 %v4851_v46, %v1454_v10  ;;  %v1466_v19 = vshll.u32 %v4853_v48, %v1454_v10 }
 0x18c   : > { %vm2828_vm6 = vcmp.lt.s32.totalorder %v2827_v23, 0  ;;  %v3790_v24 = vshrl.u32 %v1397_v35, 30  ;;  %v1470_v21 = vshrl.u32 %v4856_v8, %v1455_v18  ;;  %v1459_v32 = vor.u32 %v1458_v27, %v1457_v33 }
 0x18d   : > { %v3788_v45 = vsel %vm2828_vm6, 0, %v2827_v23  ;;  %v1462_v22 = vor.u32 %v1461_v37, %v1460_v49  ;;  %v1469_v23 = vshll.u32 %v4860_v50, %v1454_v10  ;;  %v1184_v35 = vadd.s32 %v3714_v9, %v3720_v12 }
 0x18e   : > { %v1204_v61 = vsub.s32 4294967266, %v3788_v45  ;;  %v1399_v0 = vshll.u32 %v3790_v24, 30  ;;  %v1200_v13 = vsub.s32 32, %v3788_v45  ;;  %v1465_v15 = vor.u32 %v1464_v47, %v1463_v11  ;;  %v3814_v47 = vpop.f32.mrb[8].mxu1 }
 0x18f   : > { %v1468_v43 = vor.u32 %v1467_v42, %v1466_v19  ;;  %v1097_v30 = vshll.u32 %v3736_v25, %v3775_v57  ;;  %v1471_v48 = vor.u32 %v1470_v21, %v1469_v23  ;;  %v1488_v7 = vshll.u32 %v1448_v39, 8  ;;  %v3828_v21 = vpop.f32.mrb[9].mxu1 }
 0x190   : > { %v3804_v51 = vsub.s32 %v1396_v17, %v1399_v0  ;;  %v1205_v46 = vadd.s32 127, %v1204_v61  ;;  %v1098_v8 = vshrl.u32 %v1080_v38, %v1096_v40  ;;  %v1456_v27 = vshrl.u32 %v4862_v41, %v1455_v18 }
 0x191   : > { %vm1472_vm7 = vcmp.lt.s32.totalorder %v1453_v34, 1  ;;  %v1103_v10 = vor.u32 4788187, %v1102_v59  ;;  %vm1473_vm8 = vcmp.lt.s32.totalorder %v1453_v34, 2  ;;  %vm1475_vm9 = vcmp.lt.s32.totalorder %v1453_v34, 4 }
 0x192   : > { %v1402_v17 = vsub.s32 0, %v3804_v51  ;;  %v1480_v9 = vsel %vm1472_vm7, %v1459_v32, %v1462_v22  ;;  %v1202_v12 = vshrl.u32 %v1184_v35, %v1200_v13  ;;  %vm1474_vm10 = vcmp.lt.s32.totalorder %v1453_v34, 3 }
 0x193   : > { %v1477_v37 = vsel %vm1475_vm9, %v1465_v15, 2102212464  ;;  %v1481_v33 = vsel %vm1475_vm9, %v1468_v43, 920167782  ;;  %v1206_v25 = vshll.u32 %v1205_v46, 23  ;;  %v1484_v61 = vsel %vm1472_vm7, %v1462_v22, %v1465_v15 }
 0x194   : > { %v1482_v57 = vsel %vm1474_vm10, %v1465_v15, %v1481_v33  ;;  %v1485_v39 = vsel %vm1475_vm9, %v1471_v48, 1326507024  ;;  %v2834_v38 = vmin.u32 %v1402_v17, %v3804_v51  ;;  %v1476_v40 = vsel %vm1472_vm7, %v1456_v27, %v1459_v32 }
 0x195   : > { %v1483_v18 = vsel %vm1473_vm8, %v1480_v9, %v1482_v57  ;;  %v1486_v0 = vsel %vm1474_vm10, %v1468_v43, %v1485_v39  ;;  %v1478_v49 = vsel %vm1474_vm10, %v1462_v22, %v1477_v37  ;;  %v1099_v46 = vor.u32 %v1098_v8, %v1097_v30  ;;  %v3839_v9 = vpop.permute.xlu1 %1004 }
 0x196   : > { %v1487_v42 = vsel %vm1473_vm8, %v1484_v61, %v1486_v0  ;;  %v3819_v59 = vmul.u32.u64.low %v1488_v7, %v1483_v18  ;;  %v3820_v13 = vmul.u32.u64.high %v1488_v7, %v1483_v18, %v3819_v59  ;;  %v1201_v15 = vshll.u32 %v3760_v29, %v3788_v45 }
 0x197   : > { %v3823_v11 = vmul.u32.u64.low %v1488_v7, %v1487_v42  ;;  %v3824_v19 = vmul.u32.u64.high %v1488_v7, %v1487_v42, %v3823_v11  ;;  %v1207_v48 = vor.u32 4788187, %v1206_v25  ;;  %v1404_v32 = vclz %v2834_v38 }
 0x198   : > { %v1479_v43 = vsel %vm1473_vm8, %v1476_v40, %v1478_v49  ;;  %v3833_v22 = vadd.f32 %v3622_v20, %v3576_v52  ;;  %v1104_v23 = vand.u32 2147483647, %v1103_v10  ;;  %v1203_v35 = vor.u32 %v1202_v12, %v1201_v15  ;;  %v3855_v11 = vpop.f32.mrb[10].mxu1 }
 0x199   : > { %vm1497_vm11 = vc.u32 %v3824_v19, %v3819_v59  ;;  %v1498_v8 = vadd.s32 1, %v3820_v13  ;;  %v1106_v30 = vcvt.s32.f32 %v1099_v46  ;;  %v1208_v17 = vand.u32 2147483647, %v1207_v48 }
 0x19a   : > { %4891 = vst [vmem:[#allocation16_spill] sm:$0xff] %v3833_v22  ;;  %v1495_v29 = vmul.u32 %v1488_v7, %v1479_v43  ;;  %v2835_v45 = vadd.s32 4294967294, %v1404_v32  ;;  %v1210_v37 = vcvt.s32.f32 %v1203_v35  ;;  %v3843_v52 = vmul.f32 %v3839_v9, %v3833_v22 }
 0x19b   : > { %v1499_v27 = vsel %vm1497_vm11, %v1498_v8, %v3820_v13  ;;  %v1107_v34 = vmul.f32 %v1106_v30, %v1104_v23  ;;  %v1110_v57 = vsub.s32 4, %v3722_v14  ;;  %vm1026_vm13 = vcmp.lt.s32.totalorder %v3592_v62, 0 }
 0x19c   : > { %v1500_v33 = vadd.s32 %v1499_v27, %v1495_v29  ;;  %v1211_v20 = vmul.f32 %v1210_v37, %v1208_v17  ;;  %vm2836_vm12 = vcmp.lt.s32.totalorder %v2835_v45, 0  ;;  %v1651_v7 = vand.u32 2139095040, %v3843_v52 }
 0x19d   : > { %v1108_v12 = vxor.u32 2147483648, %v1107_v34  ;;  %v1407_v39 = vsel %vm2836_vm12, 0, %v2835_v45  ;;  %vm1130_vm14 = vcmp.lt.s32.totalorder %v3600_v2, 0  ;;  %v1111_v42 = vsel %vm1026_vm13, %v1110_v57, %v3722_v14 }
 0x19e   : > { %v1501_v10 = vadd.s32 536870912, %v1500_v33  ;;  %v1212_v61 = vxor.u32 2147483648, %v1211_v20  ;;  %v1652_v40 = vshrl.u32 %v1651_v7, 23  ;;  %v1412_v49 = vsub.s32 4294967266, %v1407_v39 }
 0x19f   : > { %v1109_v18 = vsel %vm1026_vm13, %v1108_v12, %v1107_v34  ;;  %vm3859_vm15 = vcmp.le.f32.partialorder %v1024_v4, 0.7853982  ;;  %v4858_v32 = vand.u32 2147483647, %v3843_v52  ;;  %v3872_v23 = vadd.f32 %v3628_v26, %v3578_v53 }
 0x1a0   : > { %v3845_v25 = vshrl.u32 %v1501_v10, 30  ;;  %v2845_v13 = vadd.s32 4294967169, %v1652_v40  ;;  %v1213_v15 = vsel %vm1130_vm14, %v1212_v61, %v1211_v20  ;;  %v1112_v14 = vsel %vm3859_vm15, %v3592_v62, %v1109_v18 }
 0x1a1   : > { %4894 = vst [vmem:[#allocation17_spill] sm:$0xff] %v3872_v23  ;;  %v4895_v4 = vand.u32 2147483647, %v3600_v2  ;;  %v1113_v8 = vsel %vm3859_vm15, 0, %v1111_v42  ;;  %v3884_v30 = vadd.f32 %v3631_v28, %v3580_v54  ;;  %v1408_v29 = vsub.s32 32, %v1407_v39 }
 0x1a2   : > { %v1503_v38 = vshll.u32 %v3845_v25, 30  ;;  %v1658_v43 = vadd.s32 1, %v2845_v13  ;;  %v1413_v53 = vadd.s32 127, %v1412_v49  ;;  %3172 = vcosq.f32 %v1112_v14 }
 0x1a3   : > { %vm3876_vm1 = vcmp.le.f32.partialorder %v4895_v4, 0.7853982  ;;  %4898 = vst [vmem:[#allocation18_spill] sm:$0xff] %v3884_v30  ;;  %v1655_v45 = vand.u32 8388607, %v4858_v32  ;;  %3174 = vsinq.f32 %v1112_v14  ;;  %v1392_v34 = vadd.s32 %v3764_v36, %v3770_v44 }
 0x1a4   : > { %v3851_v0 = vsub.s32 %v1500_v33, %v1503_v38  ;;  %v1216_v17 = vsel %vm3876_vm1, %v3600_v2, %v1213_v15  ;;  %vm1659_vm2 = vcmp.gt.s32.totalorder %v1658_v43, 0  ;;  %v1409_v28 = vshll.u32 %v3804_v51, %v1407_v39 }
 0x1a5   : > { %v1660_v27 = vsel %vm1659_vm2, %v1658_v43, 0  ;;  %3176 = vcosq.f32 %v1216_v17  ;;  %v1117_v37 = vadd.s32 3, %v1113_v8  ;;  %v1214_v33 = vsub.s32 4, %v3750_v5 }
 0x1a6   : > { %v1506_v48 = vsub.s32 0, %v3851_v0  ;;  %v1662_v54 = vand.u32 31, %v1660_v27  ;;  %v1410_v20 = vshrl.u32 %v1392_v34, %v1408_v29  ;;  %v1414_v10 = vshll.u32 %v1413_v53, 23 }
 0x1a7   : > { %v3898_v12 = vadd.s32 %v3819_v59, %v3824_v19  ;;  %v1656_v61 = vor.u32 8388608, %v1655_v45  ;;  %v1661_v38 = vshrl.u32 %v1660_v27, 5  ;;  %v3902_v36 = vmul.f32 %v3839_v9, %v3872_v23 }
 0x1a8   : > { %v2838_v26 = vmin.u32 %v1506_v48, %v3851_v0  ;;  %v1663_v7 = vsub.s32 32, %v1662_v54  ;;  %v1665_v44 = vshll.u32 %v4862_v41, %v1662_v54  ;;  %v4899_v51 = vmov 2475754826  }
 0x1a9   : > { %v1668_v40 = vshll.u32 %v4899_v51, %v1662_v54  ;;  %v4900_v18 = vmov 2131351028   ;;  %v4901_v59 = vmov 2102212464   ;;  %v1677_v46 = vshll.u32 %v4860_v50, %v1662_v54 }
 0x1aa   : > { %v1508_v57 = vclz %v2838_v26  ;;  %v1666_v39 = vshrl.u32 %v4899_v51, %v1663_v7  ;;  %v1669_v49 = vshrl.u32 %v4900_v18, %v1663_v7  ;;  %v1671_v42 = vshll.u32 %v4900_v18, %v1662_v54 }
 0x1ab   : > { %v1672_v19 = vshrl.u32 %v4901_v59, %v1663_v7  ;;  %v1674_v13 = vshll.u32 %v4901_v59, %v1662_v54  ;;  %v1675_v14 = vshrl.u32 %v4860_v50, %v1663_v7  ;;  %v4902_v43 = vmov 1326507024  }
 0x1ac   : > { %v1667_v15 = vor.u32 %v1666_v39, %v1665_v44  ;;  %v1670_v48 = vor.u32 %v1669_v49, %v1668_v40  ;;  %v1678_v4 = vshrl.u32 %v4902_v43, %v1663_v7  ;;  %3178 = vsinq.f32 %v1216_v17  ;;  %v3173_v32 = vpop.eup %3172 }
 0x1ad   : > { %v1411_v8 = vor.u32 %v1410_v20, %v1409_v28  ;;  %v1415_v29 = vor.u32 4788187, %v1414_v10  ;;  %v1673_v53 = vor.u32 %v1672_v19, %v1671_v42  ;;  %v2839_v26 = vadd.s32 4294967294, %v1508_v57  ;;  %v3175_v44 = vpop.eup %3174  ;;  %v3918_v28 = vpop.permute.xlu1 %1009 }
 0x1ae   : > { %v1676_v45 = vor.u32 %v1675_v14, %v1674_v13  ;;  %v1679_v27 = vor.u32 %v1678_v4, %v1677_v46  ;;  %v1696_v34 = vshll.u32 %v1656_v61, 8  ;;  %v1664_v22 = vshrl.u32 %v4862_v41, %v1663_v7 }
 0x1af   : > { %vm1680_vm3 = vcmp.lt.s32.totalorder %v1661_v38, 1  ;;  %vm1683_vm4 = vcmp.lt.s32.totalorder %v1661_v38, 4  ;;  %v1755_v54 = vand.u32 2139095040, %v3902_v36  ;;  %vm1682_vm5 = vcmp.lt.s32.totalorder %v1661_v38, 3  ;;  %v3920_v20 = vpop.eup %3176 }
 0x1b0   : > { %v1685_v39 = vsel %vm1683_vm4, %v1673_v53, 2102212464  ;;  %v1688_v40 = vsel %vm1680_vm3, %v1667_v15, %v1670_v48  ;;  %v1689_v17 = vsel %vm1683_vm4, %v1676_v45, 920167782  ;;  %vm1681_vm6 = vcmp.lt.s32.totalorder %v1661_v38, 2 }
 0x1b1   : > { %v1690_v10 = vsel %vm1682_vm5, %v1673_v53, %v1689_v17  ;;  %v1692_v57 = vsel %vm1680_vm3, %v1670_v48, %v1673_v53  ;;  %v3924_v7 = vmul.f32 %v3918_v28, %v3884_v30  ;;  %vm2840_vm7 = vcmp.lt.s32.totalorder %v2839_v26, 0 }
 0x1b2   : > { %v1684_v61 = vsel %vm1680_vm3, %v1664_v22, %v1667_v15  ;;  %v1691_v49 = vsel %vm1681_vm6, %v1688_v40, %v1690_v10  ;;  %v1693_v42 = vsel %vm1683_vm4, %v1679_v27, 1326507024  ;;  %v1686_v19 = vsel %vm1682_vm5, %v1670_v48, %v1685_v39 }
 0x1b3   : > { %v1694_v13 = vsel %vm1682_vm5, %v1676_v45, %v1693_v42  ;;  %v3928_v46 = vmul.u32.u64.low %v1696_v34, %v1691_v49  ;;  %v3929_v14 = vmul.u32.u64.high %v1696_v34, %v1691_v49, %v3928_v46  ;;  %v1416_v4 = vand.u32 2147483647, %v1415_v29 }
 0x1b4   : > { %v3932_v50 = vand.u32 3, %v1117_v37  ;;  %v1695_v53 = vsel %vm1681_vm6, %v1692_v57, %v1694_v13  ;;  %v1756_v17 = vshrl.u32 %v1755_v54, 23  ;;  %v1418_v41 = vcvt.s32.f32 %v1411_v8 }
 0x1b5   : > { %v1215_v22 = vsel %vm1130_vm14, %v1214_v33, %v3750_v5  ;;  %v3938_v15 = vmul.u32.u64.low %v1696_v34, %v1695_v53  ;;  %v3939_v40 = vmul.u32.u64.high %v1696_v34, %v1695_v53, %v3938_v15  ;;  %v1511_v48 = vsel %vm2840_vm7, 0, %v2839_v26 }
 0x1b6   : > { %v1687_v45 = vsel %vm1681_vm6, %v1684_v61, %v1686_v19  ;;  %v2849_v27 = vadd.s32 4294967169, %v1756_v17  ;;  %v1963_v39 = vand.u32 2139095040, %v3924_v7  ;;  %v3943_v29 = vpop.eup %3178  ;;  %v1121_v37 = vxor.u32 2147483648, %v3175_v44  ;;  %v3969_v15 = vpop.f32.mrb[11].mxu1 }
 0x1b7   : > { %v1124_v10 = vxor.u32 2147483648, %v3173_v32  ;;  %v1706_v54 = vadd.s32 1, %v3929_v14  ;;  %v3948_v8 = vadd.f32 %v3635_v31, %v3582_v55  ;;  %v3950_v5 = vmul.f32 %v1418_v41, %v1416_v4  ;;  %4903 = vst [vmem:[#allocation19_spill] sm:$0xff] %v3969_v15 }
 0x1b8   : > { %vm1123_vm8 = vcmp.eq.s32.totalorder %v3932_v50, 2  ;;  %v1217_v33 = vsel %vm3876_vm1, 0, %v1215_v22  ;;  %v1762_v38 = vadd.s32 1, %v2849_v27  ;;  %v1512_v26 = vsub.s32 32, %v1511_v48 }
 0x1b9   : > { %v1516_v57 = vsub.s32 4294967266, %v1511_v48  ;;  %v1703_v61 = vmul.u32 %v1696_v34, %v1687_v45  ;;  %vm1705_vm9 = vc.u32 %v3939_v40, %v3928_v46  ;;  %v4864_v42 = vand.u32 2147483647, %v3902_v36 }
 0x1ba   : > { %v1707_v49 = vsel %vm1705_vm9, %v1706_v54, %v3929_v14  ;;  %vm1763_vm10 = vcmp.gt.s32.totalorder %v1762_v38, 0  ;;  %v1964_v55 = vshrl.u32 %v1963_v39, 23  ;;  %vm1120_vm11 = vcmp.eq.s32.totalorder %v3932_v50, 0 }
 0x1bb   : > { %v3960_v31 = vsel %vm1123_vm8, %v1124_v10, %v3175_v44  ;;  %v1708_v41 = vadd.s32 %v1707_v49, %v1703_v61  ;;  %v1764_v35 = vsel %vm1763_vm10, %v1762_v38, 0  ;;  %v3963_v13 = vsel %vm1120_vm11, %v3173_v32, %v1121_v37 }
 0x1bc   : > { %v3965_v34 = vadd.s32 3, %v1217_v33  ;;  %v1766_v4 = vand.u32 31, %v1764_v35  ;;  %v1513_v53 = vshll.u32 %v3851_v0, %v1511_v48  ;;  %v1514_v14 = vshrl.u32 %v3898_v12, %v1512_v26 }
 0x1bd   : > { %v1517_v17 = vadd.s32 127, %v1516_v57  ;;  %v1709_v22 = vadd.s32 536870912, %v1708_v41  ;;  %v1759_v44 = vand.u32 8388607, %v4864_v42  ;;  %v3973_v45 = vshrl.u32 %v1764_v35, 5 }
 0x1be   : > { %v1767_v27 = vsub.s32 32, %v1766_v4  ;;  %v2857_v39 = vadd.s32 4294967169, %v1964_v55  ;;  %v4904_v37 = vmov 683565275   ;;  %v1772_v54 = vshll.u32 %v4899_v51, %v1766_v4 }
 0x1bf   : > { %v3975_v32 = vshrl.u32 %v1709_v22, 30  ;;  %v1769_v10 = vshll.u32 %v4904_v37, %v1766_v4  ;;  %v1775_v0 = vshll.u32 %v4900_v18, %v1766_v4  ;;  %v1778_v38 = vshll.u32 %v4901_v59, %v1766_v4 }
 0x1c0   : > { %v1770_v12 = vshrl.u32 %v4899_v51, %v1767_v27  ;;  %v1773_v48 = vshrl.u32 %v4900_v18, %v1767_v27  ;;  %v1776_v33 = vshrl.u32 %v4901_v59, %v1767_v27  ;;  %v4905_v57 = vmov 920167782  }
 0x1c1   : > { %v1711_v26 = vshll.u32 %v3975_v32, 30  ;;  %v1779_v61 = vshrl.u32 %v4905_v57, %v1767_v27  ;;  %v1781_v49 = vshll.u32 %v4905_v57, %v1766_v4  ;;  %v1782_v55 = vshrl.u32 %v4902_v43, %v1767_v27 }
 0x1c2   : > { %v3988_v35 = vor.u32 %v1514_v14, %v1513_v53  ;;  %v1771_v22 = vor.u32 %v1770_v12, %v1769_v10  ;;  %v1774_v42 = vor.u32 %v1773_v48, %v1772_v54  ;;  %v1777_v19 = vor.u32 %v1776_v33, %v1775_v0 }
 0x1c3   : > { %vm1338_vm12 = vcmp.lt.s32.totalorder %v3608_v6, 0  ;;  %v1518_v23 = vshll.u32 %v1517_v17, 23  ;;  %vm1119_vm13 = vcmp.lt.s32.totalorder %v3932_v50, 2  ;;  %v3992_v30 = vsub.s32 %v1708_v41, %v1711_v26 }
 0x1c4   : > { %v1780_v1 = vor.u32 %v1779_v61, %v1778_v38  ;;  %v1783_v15 = vor.u32 %v1782_v55, %v1781_v49  ;;  %v1760_v3 = vor.u32 8388608, %v1759_v44  ;;  %vm1784_vm14 = vcmp.lt.s32.totalorder %v3973_v45, 1 }
 0x1c5   : > { %v4871_v4 = vand.u32 2147483647, %v3924_v7  ;;  %v1970_v63 = vadd.s32 1, %v2857_v39  ;;  %v1714_v53 = vsub.s32 0, %v3992_v30  ;;  %vm1786_vm15 = vcmp.lt.s32.totalorder %v3973_v45, 3 }
 0x1c6   : > { %vm1787_vm1 = vcmp.lt.s32.totalorder %v3973_v45, 4  ;;  %v1792_v14 = vsel %vm1784_vm14, %v1771_v22, %v1774_v42  ;;  %v1768_v41 = vshrl.u32 %v4904_v37, %v1767_v27  ;;  %vm1785_vm2 = vcmp.lt.s32.totalorder %v3973_v45, 2 }
 0x1c7   : > { %v1789_v17 = vsel %vm1787_vm1, %v1777_v19, 2102212464  ;;  %v1793_v10 = vsel %vm1787_vm1, %v1780_v1, 920167782  ;;  %v1797_v54 = vsel %vm1787_vm1, %v1783_v15, 1326507024  ;;  %v2846_v44 = vmin.u32 %v1714_v53, %v3992_v30 }
 0x1c8   : > { %v1794_v39 = vsel %vm1786_vm15, %v1777_v19, %v1793_v10  ;;  %v1796_v0 = vsel %vm1784_vm14, %v1774_v42, %v1777_v19  ;;  %v1798_v48 = vsel %vm1786_vm15, %v1780_v1, %v1797_v54  ;;  %v1800_v27 = vshll.u32 %v1760_v3, 8 }
 0x1c9   : > { %v1795_v12 = vsel %vm1785_vm2, %v1792_v14, %v1794_v39  ;;  %vm1971_vm3 = vcmp.gt.s32.totalorder %v1970_v63, 0  ;;  %v4012_v33 = vor.u32 4788187, %v1518_v23  ;;  %v1716_v15 = vclz %v2846_v44 }
 0x1ca   : > { %v1788_v38 = vsel %vm1784_vm14, %v1768_v41, %v1771_v22  ;;  %v1790_v26 = vsel %vm1786_vm15, %v1774_v42, %v1789_v17  ;;  %v1799_v19 = vsel %vm1785_vm2, %v1796_v0, %v1798_v48  ;;  %v1972_v55 = vsel %vm1971_vm3, %v1970_v63, 0 }
 0x1cb   : > { %v4020_v61 = vmul.u32.u64.low %v1800_v27, %v1795_v12  ;;  %v4021_v49 = vmul.u32.u64.high %v1800_v27, %v1795_v12, %v4020_v61  ;;  %v2847_v1 = vadd.s32 4294967294, %v1716_v15  ;;  %v4029_v23 = vand.u32 8388607, %v4871_v4 }
 0x1cc   : > { %v4024_v3 = vmul.u32.u64.low %v1800_v27, %v1799_v19  ;;  %v4025_v53 = vmul.u32.u64.high %v1800_v27, %v1799_v19, %v4024_v3  ;;  %v4906_v22 = vxor.u32 2147483648, %v3950_v5  ;;  %v4042_v63 = vsel %vm1119_vm13, %v3963_v13, %v3960_v31 }
 0x1cd   : > { %v4045_v14 = vand.u32 3, %v3965_v34  ;;  %v1974_v41 = vand.u32 31, %v1972_v55  ;;  %v1522_v17 = vcvt.s32.f32 %v3988_v35  ;;  %vm2848_vm4 = vcmp.lt.s32.totalorder %v2847_v1, 0 }
 0x1ce   : > { %v4036_v42 = vsel %vm1338_vm12, %v4906_v22, %v3950_v5  ;;  %v1791_v10 = vsel %vm1785_vm2, %v1788_v38, %v1790_v26  ;;  %v4052_v5 = vmul.f32 %v3918_v28, %v3948_v8  ;;  %v1719_v54 = vsel %vm2848_vm4, 0, %v2847_v1 }
 0x1cf   : > { %v1810_v44 = vadd.s32 1, %v4021_v49  ;;  %v4055_v50 = vshrl.u32 %v1972_v55, 5  ;;  %v1975_v31 = vsub.s32 32, %v1974_v41  ;;  %v1520_v13 = vand.u32 2147483647, %v4012_v33 }
 0x1d0   : > { %v1704_v34 = vadd.s32 %v3928_v46, %v3939_v40  ;;  %v1724_v35 = vsub.s32 4294967266, %v1719_v54  ;;  %v1968_v39 = vor.u32 8388608, %v4029_v23  ;;  %v1807_v45 = vmul.u32 %v1800_v27, %v1791_v10 }
 0x1d1   : > { %vm1809_vm5 = vc.u32 %v4025_v53, %v4020_v61  ;;  %v1977_v0 = vshll.u32 %v4904_v37, %v1974_v41  ;;  %v1978_v12 = vshrl.u32 %v4899_v51, %v1975_v31  ;;  %v1980_v38 = vshll.u32 %v4899_v51, %v1974_v41 }
 0x1d2   : > { %v1725_v48 = vadd.s32 127, %v1724_v35  ;;  %v1811_v15 = vsel %vm1809_vm5, %v1810_v44, %v4021_v49  ;;  %v1981_v33 = vshrl.u32 %v4900_v18, %v1975_v31  ;;  %v1984_v46 = vshrl.u32 %v4901_v59, %v1975_v31 }
 0x1d3   : > { %v1812_v26 = vadd.s32 %v1811_v15, %v1807_v45  ;;  %vm1992_vm6 = vcmp.lt.s32.totalorder %v4055_v50, 1  ;;  %v2067_v40 = vand.u32 2139095040, %v4052_v5  ;;  %v1720_v27 = vsub.s32 32, %v1719_v54 }
 0x1d4   : > { %v1979_v19 = vor.u32 %v1978_v12, %v1977_v0  ;;  %v1982_v55 = vor.u32 %v1981_v33, %v1980_v38  ;;  %v1983_v1 = vshll.u32 %v4900_v18, %v1974_v41  ;;  %v1726_v3 = vshll.u32 %v1725_v48, 23 }
 0x1d5   : > { %v1813_v23 = vadd.s32 536870912, %v1812_v26  ;;  %v1986_v49 = vshll.u32 %v4901_v59, %v1974_v41  ;;  %v1987_v22 = vshrl.u32 %v4905_v57, %v1975_v31  ;;  %vm1116_vm7 = vweird.f32 %v3592_v62 }
 0x1d6   : > { %v1985_v10 = vor.u32 %v1984_v46, %v1983_v1  ;;  %v1989_v44 = vshll.u32 %v4905_v57, %v1974_v41  ;;  %v1990_v35 = vshrl.u32 %v4902_v43, %v1975_v31  ;;  %vm1993_vm8 = vcmp.lt.s32.totalorder %v4055_v50, 2 }
 0x1d7   : > { %v1721_v45 = vshll.u32 %v3992_v30, %v1719_v54  ;;  %v4079_v0 = vshrl.u32 %v1813_v23, 30  ;;  %v1988_v12 = vor.u32 %v1987_v22, %v1986_v49  ;;  %vm1994_vm9 = vcmp.lt.s32.totalorder %v4055_v50, 3 }
 0x1d8   : > { %v4907_v48 = vand.u32 2147483647, %v3608_v6  ;;  %v1722_v38 = vshrl.u32 %v1704_v34, %v1720_v27  ;;  %v1991_v33 = vor.u32 %v1990_v35, %v1989_v44  ;;  %vm1995_vm11 = vcmp.lt.s32.totalorder %v4055_v50, 4 }
 0x1d9   : > { %v2000_v41 = vsel %vm1992_vm6, %v1979_v19, %v1982_v55  ;;  %v1727_v46 = vor.u32 4788187, %v1726_v3  ;;  %v1815_v30 = vshll.u32 %v4079_v0, 30  ;;  %v1976_v54 = vshrl.u32 %v4904_v37, %v1975_v31 }
 0x1da   : > { %vm4084_vm10 = vcmp.le.f32.partialorder %v4907_v48, 0.7853982  ;;  %v2001_v1 = vsel %vm1995_vm11, %v1988_v12, 920167782  ;;  %v1997_v23 = vsel %vm1995_vm11, %v1985_v10, 2102212464  ;;  %v2004_v22 = vsel %vm1992_vm6, %v1982_v55, %v1985_v10 }
 0x1db   : > { %v2002_v49 = vsel %vm1994_vm9, %v1985_v10, %v2001_v1  ;;  %v2005_v34 = vsel %vm1995_vm11, %v1991_v33, 1326507024  ;;  %vm1442_vm13 = vcmp.lt.s32.totalorder %v3620_v16, 0  ;;  %v4098_v27 = vsub.s32 %v1812_v26, %v1815_v30 }
 0x1dc   : > { %v2003_v3 = vsel %vm1993_vm8, %v2000_v41, %v2002_v49  ;;  %v2006_v44 = vsel %vm1994_vm9, %v1988_v12, %v2005_v34  ;;  %v2008_v31 = vshll.u32 %v1968_v39, 8  ;;  %v1523_v35 = vmul.f32 %v1522_v17, %v1520_v13 }
 0x1dd   : > { %v1723_v48 = vor.u32 %v1722_v38, %v1721_v45  ;;  %v1996_v1 = vsel %vm1992_vm6, %v1976_v54, %v1979_v19  ;;  %v2007_v10 = vsel %vm1993_vm8, %v2004_v22, %v2006_v44  ;;  %v1818_v33 = vsub.s32 0, %v4098_v27 }
 0x1de   : > { %v1998_v26 = vsel %vm1994_vm9, %v1982_v55, %v1997_v23  ;;  %v4111_v30 = vmul.u32.u64.low %v2008_v31, %v2007_v10  ;;  %v4112_v4 = vmul.u32.u64.high %v2008_v31, %v2007_v10, %v4111_v30  ;;  %v4910_v41 = vand.u32 2147483647, %v3620_v16 }
 0x1df   : > { %v1728_v17 = vand.u32 2147483647, %v1727_v46  ;;  %v4120_v13 = vmul.u32.u64.low %v2008_v31, %v2003_v3  ;;  %v4121_v19 = vmul.u32.u64.high %v2008_v31, %v2003_v3, %v4120_v13  ;;  %v2068_v45 = vshrl.u32 %v2067_v40, 23 }
 0x1e0   : > { %vm4116_vm14 = vcmp.le.f32.partialorder %v4910_v41, 0.7853982  ;;  %v4127_v12 = vsel %vm1116_vm7, nan, %v4042_v63  ;;  %v1228_v55 = vxor.u32 2147483648, %v3920_v20  ;;  %vm1650_vm15 = vcmp.lt.s32.totalorder %v3843_v52, 0 }
 0x1e1   : > { %v2850_v38 = vmin.u32 %v1818_v33, %v4098_v27  ;;  %v1524_v54 = vxor.u32 2147483648, %v1523_v35  ;;  %v1730_v23 = vcvt.s32.f32 %v1723_v48  ;;  %v4913_v46 = vand.u32 2147483647, %v3843_v52 }
 0x1e2   : > { %v1999_v40 = vsel %vm1993_vm8, %v1996_v1, %v1998_v26  ;;  %v2861_v62 = vadd.s32 4294967169, %v2068_v45  ;;  %v1424_v63 = vsel %vm4084_vm10, %v3608_v6, %v4036_v42  ;;  %vm1224_vm2 = vcmp.eq.s32.totalorder %v4045_v14, 0 }
 0x1e3   : > { %vm4134_vm1 = vcmp.le.f32.partialorder %v4913_v46, 0.7853982  ;;  %v1734_v22 = vsub.s32 4, %v3975_v32  ;;  %v1820_v34 = vclz %v2850_v38  ;;  %vm1223_vm3 = vcmp.lt.s32.totalorder %v4045_v14, 2 }
 0x1e4   : > { %vm1227_vm4 = vcmp.eq.s32.totalorder %v4045_v14, 2  ;;  %v1731_v3 = vmul.f32 %v1730_v23, %v1728_v17  ;;  %vm2017_vm5 = vc.u32 %v4112_v4, %v4120_v13  ;;  %v2018_v50 = vadd.s32 1, %v4121_v19 }
 0x1e5   : > { %v1225_v44 = vxor.u32 2147483648, %v3943_v29  ;;  %v2851_v48 = vadd.s32 4294967294, %v1820_v34  ;;  %v2015_v1 = vmul.u32 %v2008_v31, %v1999_v40  ;;  %v2074_v42 = vadd.s32 1, %v2861_v62 }
 0x1e6   : > { %3180 = vcosq.f32 %v1424_v63  ;;  %v1525_v10 = vsel %vm1442_vm13, %v1524_v54, %v1523_v35  ;;  %v1229_v33 = vsel %vm1227_vm4, %v1228_v55, %v3943_v29  ;;  %v2019_v26 = vsel %vm2017_vm5, %v2018_v50, %v4121_v19 }
 0x1e7   : > { %v1735_v30 = vsel %vm1650_vm15, %v1734_v22, %v3975_v32  ;;  %vm2852_vm6 = vcmp.lt.s32.totalorder %v2851_v48, 0  ;;  %v2020_v41 = vadd.s32 %v2019_v26, %v2015_v1  ;;  %vm2075_vm7 = vcmp.gt.s32.totalorder %v2074_v42, 0 }
 0x1e8   : > { %v1732_v17 = vxor.u32 2147483648, %v1731_v3  ;;  %v1823_v45 = vsel %vm2852_vm6, 0, %v2851_v48  ;;  %v4872_v31 = vand.u32 2147483647, %v4052_v5  ;;  %v2076_v38 = vsel %vm2075_vm7, %v2074_v42, 0 }
 0x1e9   : > { %v1528_v35 = vsel %vm4116_vm14, %v3620_v16, %v1525_v10  ;;  %v1824_v54 = vsub.s32 32, %v1823_v45  ;;  %v1828_v29 = vsub.s32 4294967266, %v1823_v45  ;;  %v2021_v55 = vadd.s32 536870912, %v2020_v41 }
 0x1ea   : > { %3182 = vsinq.f32 %v1424_v63  ;;  %v1226_v32 = vsel %vm1224_vm2, %v3920_v20, %v1225_v44  ;;  %v2078_v19 = vand.u32 31, %v2076_v38  ;;  %v1422_v23 = vsub.s32 4, %v3790_v24 }
 0x1eb   : > { %v1737_v46 = vsel %vm4134_vm1, 0, %v1735_v30  ;;  %v1808_v40 = vadd.s32 %v4020_v61, %v4025_v53  ;;  %v1829_v62 = vadd.s32 127, %v1828_v29  ;;  %v4171_v22 = vshrl.u32 %v2021_v55, 30 }
 0x1ec   : > { %3184 = vcosq.f32 %v1528_v35  ;;  %v1733_v63 = vsel %vm1650_vm15, %v1732_v17, %v1731_v3  ;;  %v2071_v34 = vand.u32 8388607, %v4872_v31  ;;  %v2079_v20 = vsub.s32 32, %v2078_v19 }
 0x1ed   : > { %3186 = vsinq.f32 %v1528_v35  ;;  %v4179_v50 = vsel %vm1223_vm3, %v1226_v32, %v1229_v33  ;;  %v1826_v44 = vshrl.u32 %v1808_v40, %v1824_v54  ;;  %v2023_v48 = vshll.u32 %v4171_v22, 30 }
 0x1ee   : > { %v4182_v61 = vadd.s32 3, %v1737_v46  ;;  %v1830_v53 = vshll.u32 %v1829_v62, 23  ;;  %v2082_v1 = vshrl.u32 %v4899_v51, %v2079_v20  ;;  %v4188_v3 = vsel %vm1338_vm12, %v1422_v23, %v3790_v24 }
 0x1ef   : > { %v1736_v14 = vsel %vm4134_vm1, %v3843_v52, %v1733_v63  ;;  %v1825_v42 = vshll.u32 %v4098_v27, %v1823_v45  ;;  %v4194_v10 = vsub.s32 %v2020_v41, %v2023_v48  ;;  %v2085_v33 = vshrl.u32 %v4900_v18, %v2079_v20 }
 0x1f0   : > { %v4197_v26 = vpop.eup %3180  ;;  %v2072_v30 = vor.u32 8388608, %v2071_v34  ;;  %v4199_v17 = vshrl.u32 %v2076_v38, 5  ;;  %v2081_v35 = vshll.u32 %v4904_v37, %v2078_v19  ;;  %v2088_v24 = vshrl.u32 %v4901_v59, %v2079_v20 }
 0x1f1   : > { %v1827_v54 = vor.u32 %v1826_v44, %v1825_v42  ;;  %v2026_v29 = vsub.s32 0, %v4194_v10  ;;  %v2084_v49 = vshll.u32 %v4899_v51, %v2078_v19  ;;  %v2087_v27 = vshll.u32 %v4900_v18, %v2078_v19 }
 0x1f2   : > { %v1831_v41 = vor.u32 4788187, %v1830_v53  ;;  %v2083_v45 = vor.u32 %v2082_v1, %v2081_v35  ;;  %v2090_v55 = vshll.u32 %v4901_v59, %v2078_v19  ;;  %v2091_v38 = vshrl.u32 %v4905_v57, %v2079_v20 }
 0x1f3   : > { %v2858_v32 = vmin.u32 %v2026_v29, %v4194_v10  ;;  %v2086_v23 = vor.u32 %v2085_v33, %v2084_v49  ;;  %v2093_v46 = vshll.u32 %v4905_v57, %v2078_v19  ;;  %v2094_v40 = vshrl.u32 %v4902_v43, %v2079_v20 }
 0x1f4   : > { %v4214_v62 = vpop.eup %3182  ;;  %3188 = vcosq.f32 %v1736_v14  ;;  %v1838_v63 = vsub.s32 4, %v4079_v0  ;;  %v2089_v34 = vor.u32 %v2088_v24, %v2087_v27  ;;  %v2092_v44 = vor.u32 %v2091_v38, %v2090_v55 }
 0x1f5   : > { %v2028_v48 = vclz %v2858_v32  ;;  %v2095_v53 = vor.u32 %v2094_v40, %v2093_v46  ;;  %v1425_v1 = vsel %vm4084_vm10, 0, %v4188_v3  ;;  %v1526_v42 = vsub.s32 4, %v3845_v25 }
 0x1f6   : > { %v4221_v33 = vpop.eup %3184  ;;  %v1832_v19 = vand.u32 2147483647, %v1831_v41  ;;  %v1834_v35 = vcvt.s32.f32 %v1827_v54  ;;  %vm2096_vm12 = vcmp.lt.s32.totalorder %v4199_v17, 1  ;;  %v2112_v29 = vshll.u32 %v2072_v30, 8 }
 0x1f7   : > { %v4224_v49 = vpop.eup %3186  ;;  %v2859_v24 = vadd.s32 4294967294, %v2028_v48  ;;  %vm2098_vm8 = vcmp.lt.s32.totalorder %v4199_v17, 3  ;;  %vm2099_vm9 = vcmp.lt.s32.totalorder %v4199_v17, 4  ;;  %v2104_v15 = vsel %vm2096_vm12, %v2083_v45, %v2086_v23 }
 0x1f8   : > { %v2101_v3 = vsel %vm2099_vm9, %v2089_v34, 2102212464  ;;  %v2105_v27 = vsel %vm2099_vm9, %v2092_v44, 920167782  ;;  %v2108_v54 = vsel %vm2096_vm12, %v2086_v23, %v2089_v34  ;;  %v2109_v41 = vsel %vm2099_vm9, %v2095_v53, 1326507024 }
 0x1f9   : > { %vm2860_vm10 = vcmp.lt.s32.totalorder %v2859_v24, 0  ;;  %v2080_v30 = vshrl.u32 %v4904_v37, %v2079_v20  ;;  %vm2097_vm11 = vcmp.lt.s32.totalorder %v4199_v17, 2  ;;  %v2106_v55 = vsel %vm2098_vm8, %v2089_v34, %v2105_v27 }
 0x1fa   : > { %v1835_v38 = vmul.f32 %v1834_v35, %v1832_v19  ;;  %v2031_v32 = vsel %vm2860_vm10, 0, %v2859_v24  ;;  %v2107_v46 = vsel %vm2097_vm11, %v2104_v15, %v2106_v55  ;;  %v2110_v40 = vsel %vm2098_vm8, %v2092_v44, %v2109_v41 }
 0x1fb   : > { %v2036_v48 = vsub.s32 4294967266, %v2031_v32  ;;  %v2100_v53 = vsel %vm2096_vm12, %v2080_v30, %v2083_v45  ;;  %v2102_v20 = vsel %vm2098_vm8, %v2086_v23, %v2101_v3  ;;  %v2111_v31 = vsel %vm2097_vm11, %v2108_v54, %v2110_v40  ;;  %v3155_v54 = vld [vmem:[%s4265_s23 + $0x40] sm:$0xff]  }
 0x1fc   : > { %v4248_v34 = vmul.u32.u64.low %v2112_v29, %v2111_v31  ;;  %v4249_v19 = vmul.u32.u64.high %v2112_v29, %v2111_v31, %v4248_v34  ;;  %v4251_v35 = vmul.u32.u64.low %v2112_v29, %v2107_v46  ;;  %v4252_v24 = vmul.u32.u64.high %v2112_v29, %v2107_v46, %v4251_v35  ;;  %2905 = vmatprep.subr.bf16.mxu0 %v3155_v54  ;;  %v3160_v54 = vld [vmem:[%s4265_s23 + $0x10] sm:$0xff]  }
 0x1fd   : > { %3190 = vsinq.f32 %v1736_v14  ;;  %v4916_v44 = vand.u32 2147483647, %v3902_v36  ;;  %vm1754_vm1 = vcmp.lt.s32.totalorder %v3902_v36, 0  ;;  %v2037_v45 = vadd.s32 127, %v2036_v48  ;;  %v3157_v48 = vld [vmem:[%s4265_s23 + $0x48] sm:$0xff]  }
 0x1fe   : > { %v4267_v31 = vpop.eup %3188  ;;  %v1836_v23 = vxor.u32 2147483648, %v1835_v38  ;;  %v1839_v14 = vsel %vm1754_vm1, %v1838_v63, %v4079_v0  ;;  %v2032_v3 = vsub.s32 32, %v2031_v32  ;;  %v2103_v27 = vsel %vm2097_vm11, %v2100_v53, %v2102_v20 }
 0x1ff   : > { %vm4257_vm15 = vcmp.le.f32.partialorder %v4916_v44, 0.7853982  ;;  %vm1220_vm2 = vweird.f32 %v3600_v2  ;;  %v4277_v41 = vand.u32 3, %v4182_v61  ;;  %v2016_v30 = vadd.s32 %v4120_v13, %v4112_v4  ;;  %v3156_v2 = vld [vmem:[%s4265_s23] sm:$0xff]  }
 0x200   : > { %v1429_v55 = vadd.s32 3, %v1425_v1  ;;  %v2038_v46 = vshll.u32 %v2037_v45, 23  ;;  %vm2121_vm3 = vc.u32 %v4249_v19, %v4251_v35  ;;  %v2122_v0 = vadd.s32 1, %v4252_v24  ;;  %2906 = vmatpush3.bf16.msra.mxu0 %v3156_v2 }
 0x201   : > { %v1527_v17 = vsel %vm1442_vm13, %v1526_v42, %v3845_v25  ;;  %v1231_v61 = vsel %vm1220_vm2, nan, %v4179_v50  ;;  %v1841_v63 = vsel %vm4257_vm15, 0, %v1839_v14  ;;  %v2119_v40 = vmul.u32 %v2112_v29, %v2103_v27  ;;  %2907 = vmatprep.subr.bf16.mxu0 %v3157_v48  ;;  %v3159_v14 = vld [vmem:[%s4265_s23 + $0x50] sm:$0xff]   ;;  %v4310_v27 = vpop.permute.xlu0 %2290 }
 0x202   : > { %v1837_v4 = vsel %vm1754_vm1, %v1836_v23, %v1835_v38  ;;  %v2034_v13 = vshrl.u32 %v2016_v30, %v2032_v3  ;;  %v2123_v1 = vsel %vm2121_vm3, %v2122_v0, %v4252_v24  ;;  %v2272_v25 = vmul.f32 %v4127_v12, %v4127_v12  ;;  %v3158_v24 = vld [vmem:[%s4265_s23 + $0x8] sm:$0xff]  }
 0x203   : > { %v2124_v42 = vadd.s32 %v2123_v1, %v2119_v40  ;;  %v1430_v53 = vand.u32 3, %v1429_v55  ;;  %v1529_v50 = vsel %vm4116_vm14, 0, %v1527_v17  ;;  %v2273_v20 = vmul.f32 %v1231_v61, %v1231_v61  ;;  %v3161_v40 = vld [vmem:[%s4265_s23 + $0x58] sm:$0xff]  }
 0x204   : > { %vm1747_vm13 = vcmp.eq.s32.totalorder %v4277_v41, 2  ;;  %v4300_v29 = vadd.s32 3, %v1841_v63  ;;  %v2033_v38 = vshll.u32 %v4194_v10, %v2031_v32  ;;  %v2039_v34 = vor.u32 4788187, %v2038_v46  ;;  %2908 = vmatpush3.bf16.msra.mxu0 %v3158_v24  ;;  %v3163_v24 = vld [vmem:[%s4265_s23 + $0x60] sm:$0xff]  }
 0x205   : > { %vm1744_vm4 = vcmp.eq.s32.totalorder %v4277_v41, 0  ;;  %v1840_v12 = vsel %vm4257_vm15, %v3902_v36, %v1837_v4  ;;  %v2125_v39 = vadd.s32 536870912, %v2124_v42  ;;  %v1433_v44 = vxor.u32 2147483648, %v4214_v62  ;;  %2909 = vmatprep.subr.bf16.mxu0 %v3159_v14 }
 0x206   : > { %v2035_v45 = vor.u32 %v2034_v13, %v2033_v38  ;;  %v1533_v23 = vadd.s32 3, %v1529_v50  ;;  %vm1432_vm14 = vcmp.eq.s32.totalorder %v1430_v53, 0  ;;  %v1436_v32 = vxor.u32 2147483648, %v4197_v26 }
 0x207   : > { %v3191_v3 = vpop.eup %3190  ;;  %v4312_v10 = vshrl.u32 %v2125_v39, 30  ;;  %v2308_v15 = vmul.f32 %v4310_v27, %v2272_v25  ;;  %v2309_v30 = vmul.f32 %v4310_v27, %v2273_v20  ;;  %3192 = vcosq.f32 %v1840_v12  ;;  %v3162_v25 = vld [vmem:[%s4265_s23 + $0x18] sm:$0xff]  }
 0x208   : > { %v2040_v55 = vand.u32 2147483647, %v2039_v34  ;;  %v1748_v46 = vxor.u32 2147483648, %v4267_v31  ;;  %vm1431_vm5 = vcmp.lt.s32.totalorder %v1430_v53, 2  ;;  %v1434_v17 = vsel %vm1432_vm14, %v4197_v26, %v1433_v44  ;;  %2910 = vmatpush3.bf16.msra.mxu0 %v3160_v54 }
 0x209   : > { %v2127_v0 = vshll.u32 %v4312_v10, 30  ;;  %v1745_v2 = vxor.u32 2147483648, %v3191_v3  ;;  %v2042_v61 = vcvt.s32.f32 %v2035_v45  ;;  %vm1435_vm6 = vcmp.eq.s32.totalorder %v1430_v53, 2  ;;  %2911 = vmatprep.subr.bf16.mxu0 %v3161_v40  ;;  %v3164_v45 = vld [vmem:[%s4265_s23 + $0x20] sm:$0xff]  }
 0x20a   : > { %v1534_v63 = vand.u32 3, %v1533_v23  ;;  %vm1962_vm7 = vcmp.lt.s32.totalorder %v3924_v7, 0  ;;  %v1437_v13 = vsel %vm1435_vm6, %v1436_v32, %v4214_v62  ;;  %v1537_v1 = vxor.u32 2147483648, %v4224_v49 }
 0x20b   : > { %v4323_v4 = vsub.s32 %v2124_v42, %v2127_v0  ;;  %v1540_v48 = vxor.u32 2147483648, %v4221_v33  ;;  %v4330_v26 = vadd.f32 %v2308_v15, %v3586_v58  ;;  %v4333_v50 = vadd.f32 %v2309_v30, %v3588_v60 }
 0x20c   : > { %v2043_v20 = vmul.f32 %v2042_v61, %v2040_v55  ;;  %vm1428_vm12 = vweird.f32 %v3608_v6  ;;  %v1749_v62 = vsel %vm1747_vm13, %v1748_v46, %v3191_v3  ;;  %3194 = vsinq.f32 %v1840_v12  ;;  %2912 = vmatpush3.bf16.msra.mxu0 %v3162_v25  ;;  %v3167_v25 = vld [vmem:[%s4265_s23 + $0x70] sm:$0xff]  }
 0x20d   : > { %v2130_v42 = vsub.s32 0, %v4323_v4  ;;  %v2046_v38 = vsub.s32 4, %v4171_v22  ;;  %v1746_v58 = vsel %vm1744_vm4, %v4267_v31, %v1745_v2  ;;  %v1438_v60 = vsel %vm1431_vm5, %v1434_v17, %v1437_v13  ;;  %2913 = vmatprep.subr.bf16.mxu0 %v3163_v24  ;;  %v3165_v17 = vld [vmem:[%s4265_s23 + $0x68] sm:$0xff]  }
 0x20e   : > { %vm1536_vm8 = vcmp.eq.s32.totalorder %v1534_v63, 0  ;;  %v4346_v34 = vmul.f32 %v3814_v47, %v3839_v9  ;;  %vm1539_vm9 = vcmp.eq.s32.totalorder %v1534_v63, 2  ;;  %v4353_v44 = vmul.f32 %v3584_v56, %v3828_v21  ;;  %v3166_v2 = vld [vmem:[%s4265_s23 + $0x28] sm:$0xff]  }
 0x20f   : > { %v2862_v39 = vmin.u32 %v2130_v42, %v4323_v4  ;;  %v1538_v12 = vsel %vm1536_vm8, %v4221_v33, %v1537_v1  ;;  %v2044_v31 = vxor.u32 2147483648, %v2043_v20  ;;  %v1541_v53 = vsel %vm1539_vm9, %v1540_v48, %v4224_v49 }
 0x210   : > { %v1856_v23 = vand.u32 2147483647, %v4346_v34  ;;  %v1859_v9 = vand.u32 2139095040, %v4346_v34  ;;  %vm1743_vm10 = vcmp.lt.s32.totalorder %v4277_v41, 2  ;;  %v4361_v14 = vand.u32 3, %v4300_v29  ;;  %2914 = vmatpush3.bf16.msra.mxu0 %v3164_v45  ;;  %v4405_v45 = vpop.permute.xlu1 %2295 }
 0x211   : > { %v2132_v33 = vclz %v2862_v39  ;;  %vm1532_vm11 = vweird.f32 %v3620_v16  ;;  %v4364_v56 = vpop.eup %3192  ;;  %v4366_v3 = vsel %vm1743_vm10, %v1746_v58, %v1749_v62  ;;  %v1439_v49 = vsel %vm1428_vm12, nan, %v1438_v60  ;;  %2915 = vmatprep.subr.bf16.mxu0 %v3165_v17  ;;  %v3168_v16 = vld [vmem:[%s4265_s23 + $0x30] sm:$0xff]  }
 0x212   : > { %vm1535_vm15 = vcmp.lt.s32.totalorder %v1534_v63, 2  ;;  %v1860_v32 = vshrl.u32 %v1859_v9, 23  ;;  %vm2066_vm1 = vcmp.lt.s32.totalorder %v4052_v5, 0  ;;  %v4919_v54 = vand.u32 2147483647, %v3924_v7 }
 0x213   : > { %v2863_v41 = vadd.s32 4294967294, %v2132_v33  ;;  %v1542_v29 = vsel %vm1535_vm15, %v1538_v12, %v1541_v53  ;;  %v1235_v30 = vand.u32 2139095040, %v4353_v44  ;;  %v2045_v6 = vsel %vm1962_vm7, %v2044_v31, %v2043_v20 }
 0x214   : > { %vm4373_vm2 = vcmp.le.f32.partialorder %v4919_v54, 0.7853982  ;;  %v2047_v55 = vsel %vm1962_vm7, %v2046_v38, %v4171_v22  ;;  %v2853_v46 = vadd.s32 4294967169, %v1860_v32  ;;  %v1863_v0 = vand.u32 8388607, %v1856_v23  ;;  %2916 = vmatpush3.bf16.msra.mxu0 %v3166_v2  ;;  %v3169_v32 = vld [vmem:[%s4265_s23 + $0x78] sm:$0xff]  }
 0x215   : > { %v1852_v61 = vxor.u32 2147483648, %v4364_v56  ;;  %v2120_v63 = vadd.s32 %v4251_v35, %v4249_v19  ;;  %vm2864_vm3 = vcmp.lt.s32.totalorder %v2863_v41, 0  ;;  %v1236_v40 = vshrl.u32 %v1235_v30, 23  ;;  %2917 = vmatprep.subr.bf16.mxu0 %v3167_v25 }
 0x216   : > { %v2135_v13 = vsel %vm2864_vm3, 0, %v2863_v41  ;;  %v1543_v1 = vsel %vm1532_vm11, nan, %v1542_v29  ;;  %v2275_v48 = vmul.f32 %v1439_v49, %v1439_v49  ;;  %v1866_v22 = vadd.s32 1, %v2853_v46  ;;  %v4393_v20 = vpop.eup %3194 }
 0x217   : > { %v2136_v62 = vsub.s32 32, %v2135_v13  ;;  %v2140_v42 = vsub.s32 4294967266, %v2135_v13  ;;  %v4398_v38 = vsel %vm4373_vm2, %v3924_v7, %v2045_v6  ;;  %v2049_v19 = vsel %vm4373_vm2, 0, %v2047_v55 }
 0x218   : > { %v2150_v35 = vsub.s32 4, %v4312_v10  ;;  %v1864_v58 = vor.u32 8388608, %v1863_v0  ;;  %vm1867_vm13 = vcmp.gt.s32.totalorder %v1866_v22, 0  ;;  %v2829_v60 = vadd.s32 4294967169, %v1236_v40  ;;  %2918 = vmatpush3.bf16.msra.mxu0 %v3168_v16 }
 0x219   : > { %v2137_v24 = vshll.u32 %v4323_v4, %v2135_v13  ;;  %v2138_v39 = vshrl.u32 %v2120_v63, %v2136_v62  ;;  %v2141_v12 = vadd.s32 127, %v2140_v42  ;;  %v1868_v31 = vsel %vm1867_vm13, %v1866_v22, 0  ;;  %v3170_v4 = vld [vmem:[%s4265_s23 + $0x38] sm:$0xff]   ;;  %2919 = vmatprep.subr.bf16.mxu0 %v3169_v32 }
 0x21a   : > { %v1849_v53 = vxor.u32 2147483648, %v4393_v20  ;;  %v4408_v9 = vmul.f32 %v1543_v1, %v1543_v1  ;;  %v4411_v33 = vmul.f32 %v4405_v45, %v2275_v48  ;;  %v1870_v49 = vand.u32 31, %v1868_v31 }
 0x21b   : > { %v2139_v41 = vor.u32 %v2138_v39, %v2137_v24  ;;  %v2142_v29 = vshll.u32 %v2141_v12, 23  ;;  %3196 = vcosq.f32 %v4398_v38  ;;  %v2053_v54 = vadd.s32 3, %v2049_v19 }
 0x21c   : > { %v4419_v15 = vsel %vm2066_vm1, %v2150_v35, %v4312_v10  ;;  %v1869_v30 = vshrl.u32 %v1868_v31, 5  ;;  %v1871_v6 = vsub.s32 32, %v1870_v49  ;;  %v4421_v55 = vshll.u32 %v1864_v58, 8  ;;  %2920 = vmatpush3.bf16.msra.mxu0 %v3170_v4 }
 0x21d   : > { %v2143_v46 = vor.u32 4788187, %v2142_v29  ;;  %v1873_v0 = vshll.u32 %v4904_v37, %v1870_v49  ;;  %v1876_v17 = vshll.u32 %v4899_v51, %v1870_v49  ;;  %v1242_v2 = vadd.s32 1, %v2829_v60 }
 0x21e   : > { %v2146_v63 = vcvt.s32.f32 %v2139_v41  ;;  %v4922_v40 = vand.u32 2147483647, %v4052_v5  ;;  %v1874_v10 = vshrl.u32 %v4899_v51, %v1871_v6  ;;  %v1877_v1 = vshrl.u32 %v4900_v18, %v1871_v6 }
 0x21f   : > { %v1879_v48 = vshll.u32 %v4900_v18, %v1870_v49  ;;  %v2144_v22 = vand.u32 2147483647, %v2143_v46  ;;  %v1880_v25 = vshrl.u32 %v4901_v59, %v1871_v6  ;;  %v1882_v62 = vshll.u32 %v4901_v59, %v1870_v49 }
 0x220   : > { %vm4427_vm4 = vcmp.le.f32.partialorder %v4922_v40, 0.7853982  ;;  %v1883_v42 = vshrl.u32 %v4905_v57, %v1871_v6  ;;  %vm1851_vm14 = vcmp.eq.s32.totalorder %v4361_v14, 2  ;;  %v1875_v19 = vor.u32 %v1874_v10, %v1873_v0 }
 0x221   : > { %v1878_v16 = vor.u32 %v1877_v1, %v1876_v17  ;;  %v1885_v35 = vshll.u32 %v4905_v57, %v1870_v49  ;;  %v1886_v58 = vshrl.u32 %v4902_v43, %v1871_v6  ;;  %v2147_v60 = vmul.f32 %v2146_v63, %v2144_v22 }
 0x222   : > { %v1872_v24 = vshrl.u32 %v4904_v37, %v1871_v6  ;;  %v1881_v39 = vor.u32 %v1880_v25, %v1879_v48  ;;  %v1884_v12 = vor.u32 %v1883_v42, %v1882_v62  ;;  %vm1888_vm5 = vcmp.lt.s32.totalorder %v1869_v30, 1 }
 0x223   : > { %v1887_v31 = vor.u32 %v1886_v58, %v1885_v35  ;;  %vm1890_vm6 = vcmp.lt.s32.totalorder %v1869_v30, 3  ;;  %vm1891_vm7 = vcmp.lt.s32.totalorder %v1869_v30, 4  ;;  %v2148_v32 = vxor.u32 2147483648, %v2147_v60 }
 0x224   : > { %v1892_v41 = vsel %vm1888_vm5, %v1872_v24, %v1875_v19  ;;  %v1893_v29 = vsel %vm1891_vm7, %v1881_v39, 2102212464  ;;  %v1896_v4 = vsel %vm1888_vm5, %v1875_v19, %v1878_v16  ;;  %v1897_v0 = vsel %vm1891_vm7, %v1884_v12, 920167782 }
 0x225   : > { %v1894_v46 = vsel %vm1890_vm6, %v1878_v16, %v1893_v29  ;;  %v1900_v17 = vsel %vm1888_vm5, %v1878_v16, %v1881_v39  ;;  %v1901_v40 = vsel %vm1891_vm7, %v1887_v31, 1326507024  ;;  %v4441_v49 = vpop.eup %3196  ;;  %v2149_v63 = vsel %vm2066_vm1, %v2148_v32, %v2147_v60 }
 0x226   : > { %vm1889_vm12 = vcmp.lt.s32.totalorder %v1869_v30, 2  ;;  %v1898_v6 = vsel %vm1890_vm6, %v1881_v39, %v1897_v0  ;;  %v1902_v10 = vsel %vm1890_vm6, %v1884_v12, %v1901_v40  ;;  %v1232_v25 = vand.u32 2147483647, %v4353_v44 }
 0x227   : > { %v1895_v1 = vsel %vm1889_vm12, %v1892_v41, %v1894_v46  ;;  %v1899_v48 = vsel %vm1889_vm12, %v1896_v4, %v1898_v6  ;;  %v1903_v22 = vsel %vm1889_vm12, %v1900_v17, %v1902_v10  ;;  %v2152_v62 = vsel %vm4427_vm4, %v4052_v5, %v2149_v63 }
 0x228   : > { %v4450_v42 = vmul.u32.u64.low %v4421_v55, %v1903_v22  ;;  %v4451_v19 = vmul.u32.u64.high %v4421_v55, %v1903_v22, %v4450_v42  ;;  %vm1243_vm8 = vcmp.gt.s32.totalorder %v1242_v2, 0  ;;  %3198 = vsinq.f32 %v4398_v38 }
 0x229   : > { %v4455_v30 = vmul.u32.u64.low %v4421_v55, %v1899_v48  ;;  %v4456_v16 = vmul.u32.u64.high %v4421_v55, %v1899_v48, %v4455_v30  ;;  %v1244_v35 = vsel %vm1243_vm8, %v1242_v2, 0  ;;  %v4464_v58 = vsel %vm1851_vm14, %v1852_v61, %v4393_v20 }
 0x22a   : > { %v4468_v60 = vmul.f32 %v4405_v45, %v4408_v9  ;;  %v4470_v24 = vand.u32 3, %v2053_v54  ;;  %v1246_v38 = vand.u32 31, %v1244_v35  ;;  %v2153_v39 = vsel %vm4427_vm4, 0, %v4419_v15  ;;  %v3171_v54 = vld [vmem:[%s4265_s23 + $0x80] sm:$0xff]  }
 0x22b   : > { %3200 = vcosq.f32 %v2152_v62  ;;  %v1911_v2 = vmul.u32 %v4421_v55, %v1895_v1  ;;  %v1239_v12 = vand.u32 8388607, %v1232_v25  ;;  %vm1913_vm9 = vc.u32 %v4451_v19, %v4455_v30  ;;  %2962 = vmatprep.subr.bf16.mxu1 %v3171_v54 }
 0x22c   : > { %3202 = vsinq.f32 %v2152_v62  ;;  %v4480_v61 = vshrl.u32 %v1244_v35, 5  ;;  %v1247_v9 = vsub.s32 32, %v1246_v38  ;;  %v1914_v31 = vadd.s32 1, %v4456_v16  ;;  %2963 = vmatpush3.bf16.msra.mxu1 %v3171_v54 }
 0x22d   : > { %v1249_v32 = vshll.u32 %v4904_v37, %v1246_v38  ;;  %v1252_v15 = vshll.u32 %v4899_v51, %v1246_v38  ;;  %v1255_v13 = vshll.u32 %v4900_v18, %v1246_v38  ;;  %v1258_v4 = vshll.u32 %v4901_v59, %v1246_v38 }
 0x22e   : > { %v1250_v55 = vshrl.u32 %v4899_v51, %v1247_v9  ;;  %v1253_v41 = vshrl.u32 %v4900_v18, %v1247_v9  ;;  %v1256_v29 = vshrl.u32 %v4901_v59, %v1247_v9  ;;  %v1915_v46 = vsel %vm1913_vm9, %v1914_v31, %v4456_v16 }
 0x22f   : > { %v1259_v0 = vshrl.u32 %v4905_v57, %v1247_v9  ;;  %v1261_v17 = vshll.u32 %v4905_v57, %v1246_v38  ;;  %v1262_v40 = vshrl.u32 %v4902_v43, %v1247_v9  ;;  %v1916_v63 = vadd.s32 %v1915_v46, %v1911_v2 }
 0x230   : > { %v1251_v6 = vor.u32 %v1250_v55, %v1249_v32  ;;  %v1254_v10 = vor.u32 %v1253_v41, %v1252_v15  ;;  %v1257_v1 = vor.u32 %v1256_v29, %v1255_v13  ;;  %vm2056_vm10 = vcmp.eq.s32.totalorder %v4470_v24, 0 }
 0x231   : > { %v1240_v48 = vor.u32 8388608, %v1239_v12  ;;  %v1260_v22 = vor.u32 %v1259_v0, %v1258_v4  ;;  %v4498_v62 = vmul.f32 %v3855_v11, %v3918_v28  ;;  %v1917_v42 = vadd.s32 536870912, %v1916_v63 }
 0x232   : > { %v1263_v16 = vor.u32 %v1262_v40, %v1261_v17  ;;  %vm1264_vm11 = vcmp.lt.s32.totalorder %v4480_v61, 1  ;;  %vm1267_vm15 = vcmp.lt.s32.totalorder %v4480_v61, 4  ;;  %v3199_v35 = vpop.eup %3198  ;;  %vm1848_vm1 = vcmp.eq.s32.totalorder %v4361_v14, 0 }
 0x233   : > { %v2157_v38 = vadd.s32 3, %v2153_v39  ;;  %vm1266_vm2 = vcmp.lt.s32.totalorder %v4480_v61, 3  ;;  %v1272_v2 = vsel %vm1264_vm11, %v1251_v6, %v1254_v10  ;;  %v1273_v12 = vsel %vm1267_vm15, %v1260_v22, 920167782 }
 0x234   : > { %v2060_v28 = vxor.u32 2147483648, %v4441_v49  ;;  %v4509_v54 = vshrl.u32 %v1917_v42, 30  ;;  %vm1265_vm3 = vcmp.lt.s32.totalorder %v4480_v61, 2  ;;  %v1274_v31 = vsel %vm1266_vm2, %v1257_v1, %v1273_v12 }
 0x235   : > { %v3201_v32 = vpop.eup %3200  ;;  %v1269_v39 = vsel %vm1267_vm15, %v1257_v1, 2102212464  ;;  %v1275_v15 = vsel %vm1265_vm3, %v1272_v2, %v1274_v31  ;;  %v1276_v13 = vsel %vm1264_vm11, %v1254_v10, %v1257_v1  ;;  %v1280_v55 = vshll.u32 %v1240_v48, 8 }
 0x236   : > { %v3203_v41 = vpop.eup %3202  ;;  %v2057_v29 = vxor.u32 2147483648, %v3199_v35  ;;  %v1919_v4 = vshll.u32 %v4509_v54, 30  ;;  %v1248_v46 = vshrl.u32 %v4904_v37, %v1247_v9  ;;  %v1277_v0 = vsel %vm1267_vm15, %v1263_v16, 1326507024 }
 0x237   : > { %vm1847_vm13 = vcmp.lt.s32.totalorder %v4361_v14, 2  ;;  %vm2052_vm4 = vweird.f32 %v3924_v7  ;;  %v1278_v17 = vsel %vm1266_vm2, %v1260_v22, %v1277_v0  ;;  %v2171_v1 = vand.u32 2139095040, %v4498_v62  ;;  %v4925_v0 = vld [vmem:[#allocation13_spill] sm:$0xff] }
 0x238   : > { %v4528_v40 = vmul.u32.u64.low %v1280_v55, %v1275_v15  ;;  %v4529_v42 = vmul.u32.u64.high %v1280_v55, %v1275_v15, %v4528_v40  ;;  %v4533_v48 = vsub.s32 %v1916_v63, %v1919_v4  ;;  %v1268_v9 = vsel %vm1264_vm11, %v1248_v46, %v1251_v6 }
 0x239   : > { %v1270_v16 = vsel %vm1266_vm2, %v1254_v10, %v1269_v39  ;;  %v1279_v2 = vsel %vm1265_vm3, %v1276_v13, %v1278_v17  ;;  %vm2059_vm14 = vcmp.eq.s32.totalorder %v4470_v24, 2  ;;  %v2158_v22 = vand.u32 3, %v2157_v38 }
 0x23a   : > { %v4542_v12 = vmul.u32.u64.low %v1280_v55, %v1279_v2  ;;  %v4543_v31 = vmul.u32.u64.high %v1280_v55, %v1279_v2, %v4542_v12  ;;  %vm1740_vm5 = vweird.f32 %v3843_v52  ;;  %v2058_v63 = vsel %vm2056_vm10, %v4441_v49, %v2057_v29  ;;  %v4587_v52 = vpop.permute.xlu1 %2305 }
 0x23b   : > { %v2061_v15 = vsel %vm2059_vm14, %v2060_v28, %v3199_v35  ;;  %v2164_v6 = vxor.u32 2147483648, %v3201_v32  ;;  %v1922_v4 = vsub.s32 0, %v4533_v48  ;;  %v2161_v10 = vxor.u32 2147483648, %v3203_v41  ;;  %v4926_v28 = vld [vmem:[#allocation15_spill] sm:$0xff] }
 0x23c   : > { %v1271_v39 = vsel %vm1265_vm3, %v1268_v9, %v1270_v16  ;;  %v1290_v13 = vadd.s32 1, %v4529_v42  ;;  %v2172_v38 = vshrl.u32 %v2171_v1, 23  ;;  %v1850_v46 = vsel %vm1848_vm1, %v4364_v56, %v1849_v53  ;;  %v4927_v12 = vld [vmem:[#allocation19_spill] sm:$0xff] }
 0x23d   : > { %v2323_v49 = vadd.f32 %v4411_v33, %v4925_v0  ;;  %vm2055_vm6 = vcmp.lt.s32.totalorder %v4470_v24, 2  ;;  %v2854_v35 = vmin.u32 %v1922_v4, %v4533_v48  ;;  %v2324_v61 = vadd.f32 %v4468_v60, %v4926_v28 }
 0x23e   : > { %v2062_v29 = vsel %vm2055_vm6, %v2058_v63, %v2061_v15  ;;  %vm1289_vm7 = vc.u32 %v4543_v31, %v4528_v40  ;;  %v2865_v17 = vadd.s32 4294967169, %v2172_v38  ;;  %vm2160_vm12 = vcmp.eq.s32.totalorder %v2158_v22, 0  ;;  %v4928_v63 = vld [vmem:[#allocation14_spill] sm:$0xff] }
 0x23f   : > { %vm2163_vm8 = vcmp.eq.s32.totalorder %v2158_v22, 2  ;;  %v1924_v20 = vclz %v2854_v35  ;;  %v1287_v1 = vmul.u32 %v1280_v55, %v1271_v39  ;;  %v2162_v56 = vsel %vm2160_vm12, %v3201_v32, %v2161_v10 }
 0x240   : > { %v2165_v53 = vsel %vm2163_vm8, %v2164_v6, %v3203_v41  ;;  %v1291_v33 = vsel %vm1289_vm7, %v1290_v13, %v4529_v42  ;;  %v2178_v9 = vadd.s32 1, %v2865_v17  ;;  %v1854_v24 = vsel %vm1847_vm13, %v1850_v46, %v4464_v58 }
 0x241   : > { %v2332_v60 = vpack.c.bf16 %v2323_v49, %v4330_v26  ;;  %v2063_v16 = vsel %vm2052_vm4, nan, %v2062_v29  ;;  %v1292_v2 = vadd.s32 %v1291_v33, %v1287_v1  ;;  %vm2159_vm9 = vcmp.lt.s32.totalorder %v2158_v22, 2 }
 0x242   : > { %vm2179_vm10 = vcmp.gt.s32.totalorder %v2178_v9, 0  ;;  %v4575_v55 = vmul.f32 %v4928_v63, %v4927_v12  ;;  %v2333_v32 = vpack.c.bf16 %v2324_v61, %v4333_v50  ;;  %v2166_v41 = vsel %vm2159_vm9, %v2162_v56, %v2165_v53  ;;  %v4607_v63 = vpop.permute.xlu0 %2300 }
 0x243   : > { %v2855_v42 = vadd.s32 4294967294, %v1924_v20  ;;  %v1293_v15 = vadd.s32 536870912, %v1292_v2  ;;  %v2180_v6 = vsel %vm2179_vm10, %v2178_v9, 0  ;;  %v1751_v26 = vsel %vm1740_vm5, nan, %v4366_v3 }
 0x244   : > { %vm1844_vm11 = vweird.f32 %v3902_v36  ;;  %v2281_v7 = vmul.f32 %v2063_v16, %v2063_v16  ;;  %v2182_v14 = vand.u32 31, %v2180_v6  ;;  %2512 = vmatprep.mubr.bf16.mxu0 %v2333_v32  ;;  %vm2156_vm15 = vweird.f32 %v4052_v5 }
 0x245   : > { %v1855_v58 = vsel %vm1844_vm11, nan, %v1854_v24  ;;  %v4583_v22 = vshrl.u32 %v1293_v15, 30  ;;  %v2168_v50 = vand.u32 2147483647, %v4498_v62  ;;  %2513 = vmatmul.mubr.bf16.vlgmr.msra.gmra.mrb[8].mxu0 %v2332_v60  ;;  %v2167_v4 = vsel %vm2156_vm15, nan, %v2166_v41 }
 0x246   : > { %v2183_v10 = vsub.s32 32, %v2182_v14  ;;  %v1547_v39 = vand.u32 2139095040, %v4575_v55  ;;  %v2278_v13 = vmul.f32 %v1751_v26, %v1751_v26  ;;  %vm2856_vm1 = vcmp.lt.s32.totalorder %v2855_v42, 0 }
 0x247   : > { %v1295_v36 = vshll.u32 %v4583_v22, 30  ;;  %v2279_v3 = vmul.f32 %v1855_v58, %v1855_v58  ;;  %v2317_v38 = vmul.f32 %v4587_v52, %v2281_v7  ;;  %v2282_v0 = vmul.f32 %v2167_v4, %v2167_v4  ;;  %v4929_v7 = vld [vmem:[#allocation18_spill] sm:$0xff] }
 0x248   : > { %v2186_v5 = vshrl.u32 %v4899_v51, %v2183_v10  ;;  %v2189_v46 = vshrl.u32 %v4900_v18, %v2183_v10  ;;  %v2175_v49 = vand.u32 8388607, %v2168_v50  ;;  %v2185_v35 = vshll.u32 %v4904_v37, %v2182_v14 }
 0x249   : > { %v2188_v28 = vshll.u32 %v4899_v51, %v2182_v14  ;;  %v4597_v61 = vsel %vm2856_vm1, 0, %v2855_v42  ;;  %v2181_v29 = vshrl.u32 %v2180_v6, 5  ;;  %v2192_v17 = vshrl.u32 %v4901_v59, %v2183_v10 }
 0x24a   : > { %v1548_v20 = vshrl.u32 %v1547_v39, 23  ;;  %v4600_v1 = vsub.s32 %v1292_v2, %v1295_v36  ;;  %v2187_v56 = vor.u32 %v2186_v5, %v2185_v35  ;;  %v2191_v33 = vshll.u32 %v4900_v18, %v2182_v14 }
 0x24b   : > { %v2190_v53 = vor.u32 %v2189_v46, %v2188_v28  ;;  %v2194_v9 = vshll.u32 %v4901_v59, %v2182_v14  ;;  %v2195_v24 = vshrl.u32 %v4905_v57, %v2183_v10  ;;  %v2197_v60 = vshll.u32 %v4905_v57, %v2182_v14 }
 0x24c   : > { %v2198_v16 = vshrl.u32 %v4902_v43, %v2183_v10  ;;  %v2318_v32 = vmul.f32 %v4587_v52, %v2282_v0  ;;  %v1932_v41 = vsub.s32 4294967266, %v4597_v61  ;;  %v2314_v2 = vmul.f32 %v4607_v63, %v2278_v13 }
 0x24d   : > { %v2193_v42 = vor.u32 %v2192_v17, %v2191_v33  ;;  %v2196_v15 = vor.u32 %v2195_v24, %v2194_v9  ;;  %v2315_v26 = vmul.f32 %v4607_v63, %v2279_v3  ;;  %v2329_v58 = vadd.f32 %v2317_v38, %v4929_v7 }
 0x24e   : > { %v2199_v6 = vor.u32 %v2198_v16, %v2197_v60  ;;  %v2176_v4 = vor.u32 8388608, %v2175_v49  ;;  %vm2200_vm2 = vcmp.lt.s32.totalorder %v2181_v29, 1  ;;  %v1298_v14 = vsub.s32 0, %v4600_v1 }
 0x24f   : > { %vm2203_vm3 = vcmp.lt.s32.totalorder %v2181_v29, 4  ;;  %v2208_v39 = vsel %vm2200_vm2, %v2187_v56, %v2190_v53  ;;  %v2841_v36 = vadd.s32 4294967169, %v1548_v20  ;;  %v2330_v5 = vadd.f32 %v2318_v32, %v3948_v8 }
 0x250   : > { %v1933_v46 = vadd.s32 127, %v1932_v41  ;;  %vm2202_vm13 = vcmp.lt.s32.totalorder %v2181_v29, 3  ;;  %v2209_v13 = vsel %vm2203_vm3, %v2196_v15, 920167782  ;;  %vm2201_vm4 = vcmp.lt.s32.totalorder %v2181_v29, 2  ;;  %v4930_v41 = vld [vmem:[#allocation17_spill] sm:$0xff] }
 0x251   : > { %v2205_v0 = vsel %vm2203_vm3, %v2193_v42, 2102212464  ;;  %v2210_v35 = vsel %vm2202_vm13, %v2193_v42, %v2209_v13  ;;  %v2213_v3 = vsel %vm2203_vm3, %v2199_v6, 1326507024  ;;  %v1928_v38 = vsub.s32 32, %v4597_v61 }
 0x252   : > { %v2184_v49 = vshrl.u32 %v4904_v37, %v2183_v10  ;;  %v2211_v28 = vsel %vm2201_vm4, %v2208_v39, %v2210_v35  ;;  %v2212_v17 = vsel %vm2200_vm2, %v2190_v53, %v2193_v42  ;;  %v2830_v20 = vmin.u32 %v1298_v14, %v4600_v1  ;;  %v4931_v14 = vld [vmem:[#allocation16_spill] sm:$0xff] }
 0x253   : > { %v2214_v8 = vsel %vm2202_vm13, %v2196_v15, %v2213_v3  ;;  %v2216_v33 = vshll.u32 %v2176_v4, 8  ;;  %v1554_v9 = vadd.s32 1, %v2841_v36  ;;  %v1912_v24 = vadd.s32 %v4455_v30, %v4451_v19 }
 0x254   : > { %v1934_v60 = vshll.u32 %v1933_v46, 23  ;;  %v2204_v16 = vsel %vm2200_vm2, %v2184_v49, %v2187_v56  ;;  %v2206_v32 = vsel %vm2202_vm13, %v2190_v53, %v2205_v0  ;;  %v2327_v10 = vadd.f32 %v2315_v26, %v4930_v41 }
 0x255   : > { %v2215_v6 = vsel %vm2201_vm4, %v2212_v17, %v2214_v8  ;;  %v4630_v7 = vmul.u32.u64.low %v2216_v33, %v2211_v28  ;;  %v4631_v42 = vmul.u32.u64.high %v2216_v33, %v2211_v28, %v4630_v7  ;;  %v2326_v15 = vadd.f32 %v2314_v2, %v4931_v14 }
 0x256   : > { %v1930_v4 = vshrl.u32 %v1912_v24, %v1928_v38  ;;  %v4635_v39 = vmul.u32.u64.low %v2216_v33, %v2215_v6  ;;  %v4636_v36 = vmul.u32.u64.high %v2216_v33, %v2215_v6, %v4635_v39  ;;  %v1300_v19 = vclz %v2830_v20 }
 0x257   : > { %v2207_v30 = vsel %vm2201_vm4, %v2204_v16, %v2206_v32  ;;  %vm1555_vm14 = vcmp.gt.s32.totalorder %v1554_v9, 0  ;;  %v2336_v56 = vpack.c.bf16 %v2330_v5, %v2327_v10  ;;  %v1929_v53 = vshll.u32 %v4533_v48, %v4597_v61 }
 0x258   : > { %v1935_v26 = vor.u32 4788187, %v1934_v60  ;;  %v1556_v46 = vsel %vm1555_vm14, %v1554_v9, 0  ;;  %v2335_v13 = vpack.c.bf16 %v2329_v58, %v2326_v15  ;;  %v2226_v0 = vadd.s32 1, %v4631_v42 }
 0x259   : > { %v1558_v35 = vand.u32 31, %v1556_v46  ;;  %2520 = vmatprep.mubr.bf16.mxu0 %v2336_v56  ;;  %v1931_v2 = vor.u32 %v1930_v4, %v1929_v53  ;;  %v2223_v3 = vmul.u32 %v2216_v33, %v2207_v30  ;;  %vm2225_vm5 = vc.u32 %v4636_v36, %v4630_v7 }
 0x25a   : > { %2521 = vmatmul.mubr.bf16.gmra.mrb[12].mxu0 %v2335_v13  ;;  %v2831_v29 = vadd.s32 4294967294, %v1300_v19  ;;  %v2227_v38 = vsel %vm2225_vm5, %v2226_v0, %v4631_v42  ;;  %v1936_v49 = vand.u32 2147483647, %v1935_v26  ;;  %v1544_v48 = vand.u32 2147483647, %v4575_v55 }
 0x25b   : > { %v1559_v5 = vsub.s32 32, %v1558_v35  ;;  %v2228_v28 = vadd.s32 %v2227_v38, %v2223_v3  ;;  %v1938_v61 = vcvt.s32.f32 %v1931_v2  ;;  %v1561_v16 = vshll.u32 %v4904_v37, %v1558_v35 }
 0x25c   : > { %vm2832_vm6 = vcmp.lt.s32.totalorder %v2831_v29, 0  ;;  %v1551_v24 = vand.u32 8388607, %v1544_v48  ;;  %v1564_v32 = vshll.u32 %v4899_v51, %v1558_v35  ;;  %v1570_v41 = vshll.u32 %v4901_v59, %v1558_v35 }
 0x25d   : > { %v2229_v58 = vadd.s32 536870912, %v2228_v28  ;;  %v1562_v17 = vshrl.u32 %v4899_v51, %v1559_v5  ;;  %v1565_v20 = vshrl.u32 %v4900_v18, %v1559_v5  ;;  %v1571_v8 = vshrl.u32 %v4905_v57, %v1559_v5 }
 0x25e   : > { %v1939_v33 = vmul.f32 %v1938_v61, %v1936_v49  ;;  %v1568_v60 = vshrl.u32 %v4901_v59, %v1559_v5  ;;  %v1574_v10 = vshrl.u32 %v4902_v43, %v1559_v5  ;;  %v4658_v6 = vsel %vm2832_vm6, 0, %v2831_v29 }
 0x25f   : > { %v4649_v9 = vshrl.u32 %v2229_v58, 30  ;;  %v1557_v14 = vshrl.u32 %v1556_v46, 5  ;;  %v1567_v15 = vshll.u32 %v4900_v18, %v1558_v35  ;;  %v1563_v4 = vor.u32 %v1562_v17, %v1561_v16 }
 0x260   : > { %v1566_v39 = vor.u32 %v1565_v20, %v1564_v32  ;;  %v1572_v19 = vor.u32 %v1571_v8, %v1570_v41  ;;  %v1573_v30 = vshll.u32 %v4905_v57, %v1558_v35  ;;  %vm1858_vm7 = vcmp.lt.s32.totalorder %v4346_v34, 0 }
 0x261   : > { %v2231_v42 = vshll.u32 %v4649_v9, 30  ;;  %v1569_v53 = vor.u32 %v1568_v60, %v1567_v15  ;;  %v1940_v51 = vxor.u32 2147483648, %v1939_v33  ;;  %v1552_v59 = vor.u32 8388608, %v1551_v24 }
 0x262   : > { %v1575_v26 = vor.u32 %v1574_v10, %v1573_v30  ;;  %v1308_v43 = vsub.s32 4294967266, %v4658_v6  ;;  %vm1576_vm12 = vcmp.lt.s32.totalorder %v1557_v14, 1  ;;  %vm1579_vm8 = vcmp.lt.s32.totalorder %v1557_v14, 4 }
 0x263   : > { %v2232_v56 = vsub.s32 %v2228_v28, %v2231_v42  ;;  %v1560_v46 = vshrl.u32 %v4904_v37, %v1559_v5  ;;  %vm1578_vm9 = vcmp.lt.s32.totalorder %v1557_v14, 3  ;;  %v1584_v18 = vsel %vm1576_vm12, %v1563_v4, %v1566_v39 }
 0x264   : > { %v1585_v0 = vsel %vm1579_vm8, %v1572_v19, 920167782  ;;  %vm1577_vm10 = vcmp.lt.s32.totalorder %v1557_v14, 2  ;;  %v1581_v57 = vsel %vm1579_vm8, %v1569_v53, 2102212464  ;;  %v1588_v29 = vsel %vm1576_vm12, %v1566_v39, %v1569_v53 }
 0x265   : > { %v2234_v13 = vsub.s32 0, %v2232_v56  ;;  %v1586_v35 = vsel %vm1578_vm9, %v1569_v53, %v1585_v0  ;;  %v1589_v38 = vsel %vm1579_vm8, %v1575_v26, 1326507024  ;;  %v1592_v49 = vshll.u32 %v1552_v59, 8 }
 0x266   : > { %v1587_v3 = vsel %vm1577_vm10, %v1584_v18, %v1586_v35  ;;  %v1941_v28 = vsel %vm1858_vm7, %v1940_v51, %v1939_v33  ;;  %v1309_v61 = vadd.s32 127, %v1308_v43  ;;  %v1580_v5 = vsel %vm1576_vm12, %v1560_v46, %v1563_v4 }
 0x267   : > { %v2866_v2 = vmin.u32 %v2234_v13, %v2232_v56  ;;  %v1582_v58 = vsel %vm1578_vm9, %v1566_v39, %v1581_v57  ;;  %v1590_v17 = vsel %vm1578_vm9, %v1572_v19, %v1589_v38  ;;  %vm4682_vm11 = vcmp.le.f32.partialorder %v1856_v23, 0.7853982 }
 0x268   : > { %v4675_v20 = vmul.u32.u64.low %v1592_v49, %v1587_v3  ;;  %v4676_v8 = vmul.u32.u64.high %v1592_v49, %v1587_v3, %v4675_v20  ;;  %v1591_v60 = vsel %vm1577_vm10, %v1588_v29, %v1590_v17  ;;  %v1304_v33 = vsub.s32 32, %v4658_v6 }
 0x269   : > { %v2236_v37 = vclz %v2866_v2  ;;  %v4687_v32 = vmul.u32.u64.low %v1592_v49, %v1591_v60  ;;  %v4688_v41 = vmul.u32.u64.high %v1592_v49, %v1591_v60, %v4687_v32  ;;  %v1944_v10 = vsel %vm4682_vm11, %v4346_v34, %v1941_v28 }
 0x26a   : > { %v1583_v42 = vsel %vm1577_vm10, %v1580_v5, %v1582_v58  ;;  %v1288_v15 = vadd.s32 %v4528_v40, %v4543_v31  ;;  %v1310_v4 = vshll.u32 %v1309_v61, 23  ;;  %v1602_v39 = vadd.s32 1, %v4676_v8 }
 0x26b   : > { %v2867_v24 = vadd.s32 4294967294, %v2236_v37  ;;  %v1942_v19 = vsub.s32 4, %v4509_v54  ;;  %v2224_v30 = vadd.s32 %v4630_v7, %v4636_v36  ;;  %3204 = vcosq.f32 %v1944_v10 }
 0x26c   : > { %v1306_v59 = vshrl.u32 %v1288_v15, %v1304_v33  ;;  %v1599_v26 = vmul.u32 %v1592_v49, %v1583_v42  ;;  %vm1601_vm1 = vc.u32 %v4688_v41, %v4675_v20  ;;  %3206 = vsinq.f32 %v1944_v10 }
 0x26d   : > { %vm2868_vm15 = vcmp.lt.s32.totalorder %v2867_v24, 0  ;;  %v1603_v31 = vsel %vm1601_vm1, %v1602_v39, %v4676_v8  ;;  %v1305_v13 = vshll.u32 %v4600_v1, %v4658_v6  ;;  %v1311_v46 = vor.u32 4788187, %v1310_v4 }
 0x26e   : > { %v2239_v23 = vsel %vm2868_vm15, 0, %v2867_v24  ;;  %v1604_v18 = vadd.s32 %v1603_v31, %v1599_v26  ;;  %v1943_v0 = vsel %vm1858_vm7, %v1942_v19, %v4509_v54  ;;  %v2254_v61 = vsub.s32 4, %v4649_v9 }
 0x26f   : > { %v2240_v53 = vsub.s32 32, %v2239_v23  ;;  %v2244_v51 = vsub.s32 4294967266, %v2239_v23  ;;  %v2241_v14 = vshll.u32 %v2232_v56, %v2239_v23  ;;  %v1307_v2 = vor.u32 %v1306_v59, %v1305_v13 }
 0x270   : > { %v1605_v57 = vadd.s32 536870912, %v1604_v18  ;;  %v1312_v56 = vand.u32 2147483647, %v1311_v46  ;;  %v1945_v29 = vsel %vm4682_vm11, 0, %v1943_v0  ;;  %vm2170_vm2 = vcmp.lt.s32.totalorder %v4498_v62, 0 }
 0x271   : > { %v2242_v43 = vshrl.u32 %v2224_v30, %v2240_v53  ;;  %v2245_v40 = vadd.s32 127, %v2244_v51  ;;  %v1314_v1 = vcvt.s32.f32 %v1307_v2  ;;  %v1949_v5 = vadd.s32 3, %v1945_v29 }
 0x272   : > { %v4708_v3 = vshrl.u32 %v1605_v57, 30  ;;  %vm4717_vm3 = vcmp.le.f32.partialorder %v2168_v50, 0.7853982  ;;  %v2255_v33 = vsel %vm2170_vm2, %v2254_v61, %v4649_v9  ;;  %vm1234_vm13 = vcmp.lt.s32.totalorder %v4353_v44, 0 }
 0x273   : > { %v2243_v7 = vor.u32 %v2242_v43, %v2241_v14  ;;  %v2246_v36 = vshll.u32 %v2245_v40, 23  ;;  %v1315_v54 = vmul.f32 %v1314_v1, %v1312_v56  ;;  %v1950_v32 = vand.u32 3, %v1949_v5 }
 0x274   : > { %v1607_v6 = vshll.u32 %v4708_v3, 30  ;;  %v2257_v39 = vsel %vm4717_vm3, 0, %v2255_v33  ;;  %vm4732_vm5 = vcmp.le.f32.partialorder %v1232_v25, 0.7853982  ;;  %v1600_v40 = vadd.s32 %v4675_v20, %v4688_v41 }
 0x275   : > { %v2247_v35 = vor.u32 4788187, %v2246_v36  ;;  %v2250_v49 = vcvt.s32.f32 %v2243_v7  ;;  %v3205_v37 = vpop.eup %3204  ;;  %v1316_v10 = vxor.u32 2147483648, %v1315_v54  ;;  %vm1952_vm4 = vcmp.eq.s32.totalorder %v1950_v32, 0 }
 0x276   : > { %v1608_v58 = vsub.s32 %v1604_v18, %v1607_v6  ;;  %v3207_v8 = vpop.eup %3206  ;;  %v1956_v23 = vxor.u32 2147483648, %v3205_v37  ;;  %vm1955_vm14 = vcmp.eq.s32.totalorder %v1950_v32, 2  ;;  %v2261_v51 = vadd.s32 3, %v2257_v39 }
 0x277   : > { %v2248_v38 = vand.u32 2147483647, %v2247_v35  ;;  %v1953_v4 = vxor.u32 2147483648, %v3207_v8  ;;  %v1317_v9 = vsel %vm1234_vm13, %v1316_v10, %v1315_v54  ;;  %vm1951_vm7 = vcmp.lt.s32.totalorder %v1950_v32, 2 }
 0x278   : > { %v1610_v24 = vsub.s32 0, %v1608_v58  ;;  %v1957_v53 = vsel %vm1955_vm14, %v1956_v23, %v3207_v8  ;;  %v1320_v26 = vsel %vm4732_vm5, %v4353_v44, %v1317_v9  ;;  %vm1948_vm12 = vweird.f32 %v4346_v34 }
 0x279   : > { %v2251_v28 = vmul.f32 %v2250_v49, %v2248_v38  ;;  %v1954_v30 = vsel %vm1952_vm4, %v3205_v37, %v1953_v4  ;;  %v1318_v25 = vsub.s32 4, %v4583_v22  ;;  %v2262_v46 = vand.u32 3, %v2261_v51 }
 0x27a   : > { %v2842_v15 = vmin.u32 %v1610_v24, %v1608_v58  ;;  %v1958_v43 = vsel %vm1951_vm7, %v1954_v30, %v1957_v53  ;;  %vm2260_vm10 = vweird.f32 %v4498_v62  ;;  %vm4754_vm15 = vcmp.le.f32.partialorder %v1544_v48, 0.7853982 }
 0x27b   : > { %v2252_v17 = vxor.u32 2147483648, %v2251_v28  ;;  %v1959_v2 = vsel %vm1948_vm12, nan, %v1958_v43  ;;  %v1319_v20 = vsel %vm1234_vm13, %v1318_v25, %v4583_v22  ;;  %vm2267_vm8 = vcmp.eq.s32.totalorder %v2262_v46, 2 }
 0x27c   : > { %v1612_v50 = vclz %v2842_v15  ;;  %v2280_v34 = vmul.f32 %v1959_v2, %v1959_v2  ;;  %vm2264_vm9 = vcmp.eq.s32.totalorder %v2262_v46, 0  ;;  %vm2263_vm11 = vcmp.lt.s32.totalorder %v2262_v46, 2 }
 0x27d   : > { %v2253_v16 = vsel %vm2170_vm2, %v2252_v17, %v2251_v28  ;;  %v1321_v6 = vsel %vm4732_vm5, 0, %v1319_v20  ;;  %v1630_v17 = vsub.s32 4, %v4708_v3  ;;  %vm1546_vm1 = vcmp.lt.s32.totalorder %v4575_v55, 0 }
 0x27e   : > { %v2256_v42 = vsel %vm4717_vm3, %v4498_v62, %v2253_v16  ;;  %v2843_v19 = vadd.s32 4294967294, %v1612_v50  ;;  %v2316_v54 = vmul.f32 %v4607_v63, %v2280_v34  ;;  %v1325_v8 = vadd.s32 3, %v1321_v6 }
 0x27f   : > { %3208 = vcosq.f32 %v2256_v42  ;;  %vm1324_vm4 = vweird.f32 %v4353_v44  ;;  %vm1636_vm7 = vweird.f32 %v4575_v55 }
 0x280   : > { %3210 = vsinq.f32 %v2256_v42  ;;  %vm2844_vm6 = vcmp.lt.s32.totalorder %v2843_v19, 0  ;;  %v2328_v63 = vadd.f32 %v3814_v47, %v2316_v54  ;;  %v1631_v42 = vsel %vm1546_vm1, %v1630_v17, %v4708_v3 }
 0x281   : > { %v1615_v14 = vsel %vm2844_vm6, 0, %v2843_v19  ;;  %3212 = vcosq.f32 %v1320_v26  ;;  %v1326_v15 = vand.u32 3, %v1325_v8  ;;  %v1633_v39 = vsel %vm4754_vm15, 0, %v1631_v42 }
 0x282   : > { %v1616_v31 = vsub.s32 32, %v1615_v14  ;;  %v1620_v13 = vsub.s32 4294967266, %v1615_v14  ;;  %v1617_v18 = vshll.u32 %v1608_v58, %v1615_v14  ;;  %3214 = vsinq.f32 %v1320_v26 }
 0x283   : > { %vm1328_vm2 = vcmp.eq.s32.totalorder %v1326_v15, 0  ;;  %vm1331_vm3 = vcmp.eq.s32.totalorder %v1326_v15, 2  ;;  %v1637_v50 = vadd.s32 3, %v1633_v39  ;;  %vm1327_vm13 = vcmp.lt.s32.totalorder %v1326_v15, 2 }
 0x284   : > { %v1618_v7 = vshrl.u32 %v1600_v40, %v1616_v31  ;;  %v1621_v36 = vadd.s32 127, %v1620_v13 }
 0x285   : > { %v1638_v9 = vand.u32 3, %v1637_v50 }
 0x286   : > { %v1619_v56 = vor.u32 %v1618_v7, %v1617_v18  ;;  %v1622_v29 = vshll.u32 %v1621_v36, 23 }
 0x287   : > { %vm1643_vm14 = vcmp.eq.s32.totalorder %v1638_v9, 2  ;;  %vm1640_vm5 = vcmp.eq.s32.totalorder %v1638_v9, 0  ;;  %vm1639_vm6 = vcmp.lt.s32.totalorder %v1638_v9, 2 }
 0x288   : > { %v1623_v49 = vor.u32 4788187, %v1622_v29  ;;  %v1626_v37 = vcvt.s32.f32 %v1619_v56 }
 0x289   : > { %v3209_v0 = vpop.eup %3208 }
 0x28a   : > { %v3211_v57 = vpop.eup %3210  ;;  %v2268_v35 = vxor.u32 2147483648, %v3209_v0  ;;  %v1624_v61 = vand.u32 2147483647, %v1623_v49 }
 0x28b   : > { %v2265_v41 = vxor.u32 2147483648, %v3211_v57  ;;  %v3213_v24 = vpop.eup %3212 }
 0x28c   : > { %v2269_v38 = vsel %vm2267_vm8, %v2268_v35, %v3211_v57  ;;  %v1627_v58 = vmul.f32 %v1626_v37, %v1624_v61  ;;  %v3215_v16 = vpop.eup %3214  ;;  %v1332_v23 = vxor.u32 2147483648, %v3213_v24 }
 0x28d   : > { %v2266_v1 = vsel %vm2264_vm9, %v3209_v0, %v2265_v41  ;;  %v1329_v4 = vxor.u32 2147483648, %v3215_v16 }
 0x28e   : > { %v2270_v28 = vsel %vm2263_vm11, %v2266_v1, %v2269_v38  ;;  %v1628_v62 = vxor.u32 2147483648, %v1627_v58 }
 0x28f   : > { %v2271_v5 = vsel %vm2260_vm10, nan, %v2270_v28  ;;  %v1330_v47 = vsel %vm1328_vm2, %v3213_v24, %v1329_v4 }
 0x290   : > { %v2283_v22 = vmul.f32 %v2271_v5, %v2271_v5  ;;  %v1629_v10 = vsel %vm1546_vm1, %v1628_v62, %v1627_v58 }
 0x292   : > { %v2319_v60 = vmul.f32 %v4587_v52, %v2283_v22  ;;  %v1632_v52 = vsel %vm4754_vm15, %v4575_v55, %v1629_v10 }
 0x293   : > { %3216 = vcosq.f32 %v1632_v52 }
 0x294   : > { %v2331_v32 = vadd.f32 %v3855_v11, %v2319_v60  ;;  %3218 = vsinq.f32 %v1632_v52  ;;  %v1333_v11 = vsel %vm1331_vm3, %v1332_v23, %v3215_v16 }
 0x295   : > { %v1334_v3 = vsel %vm1327_vm13, %v1330_v47, %v1333_v11 }
 0x296   : > { %v2337_v48 = vpack.c.bf16 %v2331_v32, %v2328_v63  ;;  %v1335_v30 = vsel %vm1324_vm4, nan, %v1334_v3 }
 0x297   : > { %v2274_v26 = vmul.f32 %v1335_v30, %v1335_v30 }
 0x299   : > { %v2310_v13 = vmul.f32 %v4310_v27, %v2274_v26 }
 0x29b   : > { %v2322_v46 = vadd.f32 %v2310_v13, %v3828_v21 }
 0x29d   : > { %v3217_v19 = vpop.eup %3216 }
 0x29e   : > { %v3219_v53 = vpop.eup %3218  ;;  %v1644_v51 = vxor.u32 2147483648, %v3217_v19 }
 0x29f   : > { %v1641_v59 = vxor.u32 2147483648, %v3219_v53 }
 0x2a0   : > { %v1645_v14 = vsel %vm1643_vm14, %v1644_v51, %v3219_v53 }
 0x2a1   : > { %v1642_v43 = vsel %vm1640_vm5, %v3217_v19, %v1641_v59 }
 0x2a2   : > { %v1646_v40 = vsel %vm1639_vm6, %v1642_v43, %v1645_v14 }
 0x2a3   : > { %v1647_v31 = vsel %vm1636_vm7, nan, %v1646_v40 }
 0x2a4   : > { %v2277_v25 = vmul.f32 %v1647_v31, %v1647_v31 }
 0x2a6   : > { %v2313_v44 = vmul.f32 %v4405_v45, %v2277_v25 }
 0x2a8   : > { %v2325_v18 = vadd.f32 %v2313_v44, %v4927_v12 }
 0x2aa   : > { %v2334_v7 = vpack.c.bf16 %v2325_v18, %v2322_v46 }
 0x2ac   : > { %2964 = vmatprep.mubr.msk.bf16.mxu1 %vm637_vm0, %v2334_v7 }
 0x2ad   : > { %2965 = vmatmul.mubr.msk.bf16.vlgmr.msra.gmra.mrb[12].mxu1 %vm637_vm0, %v2337_v48 }
 0x318   : > { %v2921_v36 = vpop.f32.mrb[8].mxu0 }
 0x319   : > { %v2922_v55 = vpop.f32.mrb[9].mxu0 }
 0x31a   : > { %v2923_v0 = vadd.f32 %v2922_v55, %v2921_v36  ;;  %v2924_v2 = vpop.f32.mrb[10].mxu0 }
 0x31b   : > { %v2925_v57 = vpop.f32.mrb[11].mxu0 }
 0x31c   : > { %v2926_v27 = vadd.f32 %v2925_v57, %v2924_v2 }
 0x32d   : > { %v2927_v35 = vpop.f32.mrb[12].mxu0 }
 0x32e   : > { %v2928_v56 = vpop.f32.mrb[13].mxu0 }
 0x32f   : > { %v2929_v45 = vadd.f32 %v2928_v56, %v2927_v35  ;;  %v2930_v29 = vpop.f32.mrb[14].mxu0 }
 0x330   : > { %v2931_v21 = vpop.f32.mrb[15].mxu0 }
 0x331   : > { %v2932_v20 = vadd.f32 %v2931_v21, %v2930_v29 }
 0x380   : > { %v2966_v12 = vpop.f32.mrb[12].mxu1 }
 0x381   : > { %v2572_v41 = vadd.f32 %v2966_v12, %v2929_v45  ;;  %v2563_v34 = vpop.f32.mrb[13].mxu1 }
 0x382   : > { %v2564_v38 = vadd.f32 %v2923_v0, %v2563_v34  ;;  %v2967_v49 = vpop.f32.mrb[14].mxu1 }
 0x383   : > { %2580 = vst [vmem:[%s528_s11 + $0x10] sm:$0xff] %v2572_v41  ;;  %v2575_v1 = vadd.f32 %v2967_v49, %v2932_v20  ;;  %v2566_v6 = vpop.f32.mrb[15].mxu1 }
 0x384   : > { %2578 = vst [vmem:[%s528_s11] sm:$0xff] %v2564_v38  ;;  %v2567_v28 = vadd.f32 %v2926_v27, %v2566_v6 }
 0x385   : > { %2581 = vst [vmem:[%s528_s11 + $0x18] sm:$0xff] %v2575_v1 }
 0x386   : > { %2579 = vst [vmem:[%s528_s11 + $0x8] sm:$0xff] %v2567_v28 }
 0x387   : > { %3245 = shalt.err (!%p3242_p5)
}
 0x388   : > { %s3246_s15 = scalar_lea.hbm %s4782_s19, 512  ;;  %s3250_s21 = scalar_lea.hbm %s4844_s8, 2048 }
 0x389   : > { %p3247_p6 = scmp.ne.s32.totalorder %s4782_s19, %s3246_s15  ;;  %p3251_p9 = scmp.lt.u32.totalorder %s4782_s19, %s4844_s8 }
 0x38a   : > { %p3252_p10 = scmp.lt.u32.totalorder %s3250_s21, %s3246_s15  ;;  %p3254_p12 = scmp.lt.u32.totalorder %s3246_s15, %s4782_s19 }
 0x38b   : > { %p3248_p7 = pnand %p3247_p6, %p3467_p2 }
 0x38c   : > { %p3253_p11 = por %p3252_p10, %p3251_p9 }
 0x38d   : > { %p3249_p8 = pneg %p3248_p7 }
 0x38e   : > { %p3255_p13 = por %p3254_p12, %p3253_p11 }
 0x390   : > { %p3256_p0 = pnand %p3255_p13, %p3249_p8 }
 0x392   : > { %3259 = shalt.err (!%p3256_p0)
}
 0x393   : > { %s3339_s11 = smov 128   ;;  %s3340_s2 = smov 512  }
 0x394   : > { %s3341_s18 = smov 8  }
 0x395   : > { %3031 = dma.vmem_to_hbm [thread:$0]  (%p3467_p2), %s4777_s1, 512, %s4782_s19, %s2583_s14, %s3339_s11, %s3340_s2, %s3341_s18  }
 0x396 PF: > { %p3037_p1 = scmp.ge.s32.totalorder %s3328_s16, 2  ;;  %s2613_s20 = sand.u32 1, %s3300_s10  }
 0x397   : > { %s2614_s25 = scalar_lea.sflag [#allocation7], %s2613_s20 }
 0x398   : > { %p3034_p4 = pnand %p3037_p1, %p3471_p3 }
 0x39a   : > { %3295 = dma.done.wait (!%p3034_p4), %s2614_s25, 512  }
 0x39b   : > { %3297 = vsyncadd (!%p3034_p4), %s2614_s25, 4294966784  ;;  %s27_s16 = sadd.s32 1, %s3328_s16   ;;  %s4940_s30 = sld [smem:[#allocation12_spill]] }
 0x39c   : > { %p24_p5 = scmp.ge.s32.totalorder %s27_s16, 6   ;;  %s4941_s14 = sld [smem:[#allocation10_spill]] }
 0x39d   : > { %s4942_s15 = sld [smem:[#allocation11_spill]]  ;;  %s4943_s10 = smov %s3312_s12 }
 0x39e   : > { %s4944_s11 = smov %s3308_s0  ;;  %s4945_s0 = smov %s3460_s29 }
 0x39f   : > { %s4946_s12 = smov %s3316_s13  ;;  %26 = sbr.rel (!%p24_p5) target bundleno = 21 (0x15), region = 193 }
 0x3a1   : > { %s4947_s13 = smov %s4940_s30 }
 0x3a6   :  { %2619 = vsyncpa [#allocation7], 1 }
 0x3a7   :  { %2621 = vsyncpa [#allocation7 + $0x1], 1 }

</bundles_post_ra>
